<compile_context>
chip_gen: v5e
topology: v5e:2x2
jax: 0.10.0
libtpu: 0.0.40
codegen_flags: <defaults>
</compile_context>

<pallas_src>
import functools
import math

import jax
import jax.numpy as jnp
from jax.experimental import pallas as pl
from jax.experimental.pallas import tpu as pltpu

LEAKY_SLOPE = 0.01  # torch.nn.LeakyReLU default negative_slope


def _leaky_relu(x):
    return jnp.where(x >= 0, x, LEAKY_SLOPE * x)


def _round_up(a, b):
    return ((a + b - 1) // b) * b


def _densenet_kernel(tdim, hidden, nresnet,
                     act_ref, mf_ref, mb_ref, w_ref, out_ref):
    """One fused forward pass over a batch tile (feature-major layout).

    act_ref : (1 + x_dim, bn) f32   row 0 = t, rows 1:3 = x (transposed)
    mf_ref  : (2H, L + 7)     f32   per-layer bias columns + small f32 params
    mb_ref  : (H + 8, 2H)     bf16  time_dense weight (H,T) + wf2^T (2,2H, zero-padded to 8 rows)
    w_ref   : (L, 2H, H)      bf16  stacked / fused layer weights, (out, in)
    out_ref : (x_dim, bn)     f32
    """
    T, H, R = tdim, hidden, nresnet
    W2 = 2 * H
    L = R + 3
    bf16 = jnp.bfloat16

    t = act_ref[0:1, :]                       # (1, bn)
    x = act_ref[1:3, :]                       # (2, bn)

    # --- misc slab views (all static slices) ---
    bt    = mf_ref[0:H, L + 0:L + 1]          # (H, 1)
    bin_  = mf_ref[0:H, L + 1:L + 2]          # (H, 1)
    win0  = mf_ref[0:H, L + 2:L + 3]          # (H, 1)
    win1  = mf_ref[0:H, L + 3:L + 4]          # (H, 1)
    bf2   = mf_ref[0:2, L + 4:L + 5]          # (2, 1)
    freqs = mf_ref[0:T, L + 5:L + 6]          # (T, 1)  [freqs, freqs]
    phase = mf_ref[0:T, L + 6:L + 7]          # (T, 1)  [0..., -pi/2...] -> cos/sin select

    def bias(l):
        return mf_ref[:, l:l + 1]             # (2H, 1)

    def mm(w_bf16, h_f32):                    # bf16 MXU matmul, f32 accumulation
        return jnp.dot(w_bf16, h_f32.astype(bf16),
                       preferred_element_type=jnp.float32)

    # --- sinusoidal timestep embedding: cos(f*t + phase) == [cos(ft), sin(ft)] ---
    emb = jnp.cos(freqs * t + phase)                                      # (T, bn)

    # --- time_dense: Linear(T, H) + LeakyReLU (MXU, bf16) ---
    embed = _leaky_relu(mm(mb_ref[0:H, 0:T], emb) + bt)                   # (H, bn)

    # --- inputs_dense: Linear(2, H) + LeakyReLU on the VPU (K = 2), f32 ---
    xin = _leaky_relu(win0 * x[0:1, :] + win1 * x[1:2, :] + bin_)         # (H, bn)

    h = embed + xin

    # --- residual block: Linear -> LeakyReLU -> Linear (weights zero-padded to 2H rows) ---
    z = mm(w_ref[0], h) + bias(0)
    h = _leaky_relu(z[0:H, :])
    z = mm(w_ref[1], h) + bias(1)
    h = z[0:H, :]

    # --- ResNetDense blocks: fused [residual ; layer] single matmul per block ---
    for r in range(R):                         # static unroll
        l = 2 + r
        z = mm(w_ref[l], h) + bias(l)
        h = z[0:H, :] + _leaky_relu(z[H:W2, :])

    # --- final layer: Linear(H, 2H) -> LeakyReLU -> Linear(2H, 2) + input skip ---
    lf = L - 1
    f = _leaky_relu(mm(w_ref[lf], h) + bias(lf))                          # (2H, bn)
    proj = mm(mb_ref[H:H + 8, 0:W2], f)       # (8, bn); rows 2:8 multiply zero weights
    out_ref[...] = proj[0:2, :] + bf2 + x     # lane-dense (2, bn) store


def densenet_forward(packed, inputs, steps, noise_levels, block_n=None):
    """Glue: noise-level gather, transpose to feature-major, lane padding.

    All math runs inside the kernel; returns (N, x_dim)."""
    T, H, R, X = (packed["time_embed_dim"], packed["hidden_dim"],
                  packed["nresnet"], packed["x_dim"])
    N, x_dim = inputs.shape
    assert x_dim == 2 and X == 2, "kernel hard-codes x_dim == 2"

    t = noise_levels[steps].astype(jnp.float32)                                   # (N,)
    act = jnp.concatenate([t[None, :], inputs.astype(jnp.float32).T], axis=0)     # (3, N)

    # Lane-dense batch tiling: pad N to a multiple of 128; default tile = 512 rows
    # (sweepable). Use >=2 grid steps when the batch allows so the "parallel"
    # grid axis shards across both v7x TensorCores.
    if block_n is None:
        block_n = 512
    block_n = max(128, _round_up(block_n, 128))
    Np = _round_up(N, 128)
    if Np <= block_n:
        block_n = Np // 2 if (Np % 256 == 0 and Np >= 256) else Np
    else:
        Np = _round_up(Np, block_n)
    act = jnp.pad(act, ((0, 0), (0, Np - N)))
    grid = (Np // block_n,)

    mf, mb, ws = packed["misc_f32"], packed["misc_bf16"], packed["wstack"]
    kernel = functools.partial(_densenet_kernel, T, H, R)

    out = pl.pallas_call(
        kernel,
        out_shape=jax.ShapeDtypeStruct((X, Np), jnp.float32),
        grid_spec=pltpu.PrefetchScalarGridSpec(
            num_scalar_prefetch=0,
            grid=grid,
            in_specs=[
                pl.BlockSpec((1 + X, block_n), lambda i: (0, i)),
                pl.BlockSpec(mf.shape, lambda i: (0, 0)),        # resident weights
                pl.BlockSpec(mb.shape, lambda i: (0, 0)),        # resident weights
                pl.BlockSpec(ws.shape, lambda i: (0, 0, 0)),     # resident weights
            ],
            out_specs=pl.BlockSpec((X, block_n), lambda i: (0, i)),
        ),
        compiler_params=pltpu.CompilerParams(
            dimension_semantics=("parallel",)),
    )(act, mf, mb, ws)
    return out[:, :N].T


def init_params(key, x_dim=2, hidden=64, tdim=16, nresnet=4):
    """Deterministic parameter init (PyTorch-Linear-style uniform), weights as [in, out]."""
    ks = jax.random.split(key, 4 + 2 * nresnet + 2)

    def lin(k, fan_in, fan_out):
        k1, k2 = jax.random.split(k)
        bound = 1.0 / math.sqrt(fan_in)
        w = jax.random.uniform(k1, (fan_in, fan_out), jnp.float32, -bound, bound)
        b = jax.random.uniform(k2, (1, fan_out), jnp.float32, -bound, bound)
        return w, b

    wt, bt = lin(ks[0], tdim, hidden)
    win, bin_ = lin(ks[1], x_dim, hidden)
    wr1, br1 = lin(ks[2], hidden, hidden)
    wr2, br2 = lin(ks[3], hidden, hidden)
    wres, bres, wl, bl = [], [], [], []
    for i in range(nresnet):
        w, b = lin(ks[4 + 2 * i], hidden, hidden); wres.append(w); bres.append(b)
        w, b = lin(ks[5 + 2 * i], hidden, hidden); wl.append(w); bl.append(b)
    wf1, bf1 = lin(ks[4 + 2 * nresnet], hidden, 2 * hidden)
    wf2, bf2 = lin(ks[5 + 2 * nresnet], 2 * hidden, x_dim)

    return dict(
        time_embed_dim=tdim, hidden_dim=hidden, x_dim=x_dim, nresnet=nresnet,
        wt=wt, bt=bt, win=win, bin=bin_,
        wr1=wr1, br1=br1, wr2=wr2, br2=br2,
        wres=jnp.stack(wres), bres=jnp.stack(bres),
        wl=jnp.stack(wl), bl=jnp.stack(bl),
        wf1=wf1, bf1=bf1, wf2=wf2, bf2=bf2,
    )


def pack_params(p):
    """Pack per-layer params into 3 feature-major slabs consumed by the kernel.

    misc_f32 : (2H, L + 7) f32   cols 0:L layer biases; then bt, bin, win0, win1,
                                 bf2, freqs, phase as columns
    misc_bf16: (H + 8, 2H) bf16  rows 0:H cols 0:T = wt^T; rows H:H+2 = wf2^T
    wstack   : (L, 2H, H)  bf16  [wr1^T;0], [wr2^T;0], nresnet x [wres^T;wl^T], wf1^T
    """
    H = p["hidden_dim"]; T = p["time_embed_dim"]; X = p["x_dim"]; R = p["nresnet"]
    assert X == 2, "kernel's VPU input/output projections assume x_dim == 2"
    half = T // 2
    W2 = 2 * H
    L = R + 3

    # --- stacked matmul weights, transposed to (out, in), bf16 ---
    wstack = jnp.zeros((L, W2, H), jnp.float32)
    wstack = wstack.at[0, 0:H, :].set(p["wr1"].T)
    wstack = wstack.at[1, 0:H, :].set(p["wr2"].T)
    for r in range(R):
        wstack = wstack.at[2 + r, 0:H, :].set(p["wres"][r].T)
        wstack = wstack.at[2 + r, H:W2, :].set(p["wl"][r].T)
    wstack = wstack.at[L - 1].set(p["wf1"].T)
    wstack = wstack.astype(jnp.bfloat16)

    # --- small bf16 matmul operands ---
    misc_bf16 = jnp.zeros((H + 8, W2), jnp.float32)
    misc_bf16 = misc_bf16.at[0:H, 0:T].set(p["wt"].T)
    misc_bf16 = misc_bf16.at[H:H + 2, 0:W2].set(p["wf2"].T)
    misc_bf16 = misc_bf16.astype(jnp.bfloat16)

    # --- f32 biases / VPU weights / trig table, packed as columns ---
    misc_f32 = jnp.zeros((W2, L + 7), jnp.float32)
    misc_f32 = misc_f32.at[0:H, 0].set(p["br1"][0])
    misc_f32 = misc_f32.at[0:H, 1].set(p["br2"][0])
    for r in range(R):
        misc_f32 = misc_f32.at[0:H, 2 + r].set(p["bres"][r, 0])
        misc_f32 = misc_f32.at[H:W2, 2 + r].set(p["bl"][r, 0])
    misc_f32 = misc_f32.at[:, L - 1].set(p["bf1"][0])
    misc_f32 = misc_f32.at[0:H, L + 0].set(p["bt"][0])
    misc_f32 = misc_f32.at[0:H, L + 1].set(p["bin"][0])
    misc_f32 = misc_f32.at[0:H, L + 2].set(p["win"][0])
    misc_f32 = misc_f32.at[0:H, L + 3].set(p["win"][1])
    misc_f32 = misc_f32.at[0:X, L + 4].set(p["bf2"][0])
    freqs = jnp.exp(-math.log(10000.0) * jnp.arange(half, dtype=jnp.float32) / half)
    misc_f32 = misc_f32.at[0:T, L + 5].set(jnp.concatenate([freqs, freqs]))
    misc_f32 = misc_f32.at[half:T, L + 6].set(-jnp.pi / 2.0)   # cos(a - pi/2) == sin(a)

    return dict(time_embed_dim=T, hidden_dim=H, x_dim=X, nresnet=R,
                misc_f32=misc_f32, misc_bf16=misc_bf16, wstack=wstack)


def densenet_reference(params, inputs, steps, noise_levels, matmul_dtype=jnp.float32):
    """Pure-JAX reference mirroring the PyTorch forward.

    matmul_dtype=jnp.bfloat16 reproduces the kernel's mixed-precision numerics
    (bf16 MXU operands, f32 accumulation); float32 gives the exact module math."""
    def mm(a, b):
        return jnp.dot(a.astype(matmul_dtype), b.astype(matmul_dtype),
                       preferred_element_type=jnp.float32)

    t = noise_levels[steps].astype(jnp.float32)
    tdim = params["time_embed_dim"]
    half = tdim // 2
    freqs = jnp.exp(-math.log(10000.0) * jnp.arange(half, dtype=jnp.float32) / half)
    a = t[:, None] * freqs[None]
    emb = jnp.concatenate([jnp.cos(a), jnp.sin(a)], axis=-1)

    embed = _leaky_relu(mm(emb, params["wt"]) + params["bt"])
    xin = _leaky_relu(inputs @ params["win"] + params["bin"])  # kernel keeps this f32 (VPU)
    h = xin + embed
    h = mm(_leaky_relu(mm(h, params["wr1"]) + params["br1"]), params["wr2"]) + params["br2"]
    for r in range(params["nresnet"]):
        res = mm(h, params["wres"][r]) + params["bres"][r]
        lay = _leaky_relu(mm(h, params["wl"][r]) + params["bl"][r])
        h = res + lay
    f = _leaky_relu(mm(h, params["wf1"]) + params["bf1"])
    out = mm(f, params["wf2"]) + params["bf2"]
    return out + inputs


if __name__ == "__main__":
    key = jax.random.PRNGKey(0)
    k_par, k_x, k_s = jax.random.split(key, 3)

    N, X_DIM, HIDDEN, TDIM, NRESNET = 8, 2, 64, 16, 4
    NUM_LEVELS = 50

    params = init_params(k_par, x_dim=X_DIM, hidden=HIDDEN, tdim=TDIM, nresnet=NRESNET)
    packed = pack_params(params)
    inputs = jax.random.normal(k_x, (N, X_DIM), dtype=jnp.float32)
    steps = jax.random.randint(k_s, (N,), 0, NUM_LEVELS)
    noise_levels = jnp.linspace(0.01, 1.0, NUM_LEVELS, dtype=jnp.float32)

    out = densenet_forward(packed, inputs, steps, noise_levels)
    out = jax.block_until_ready(out)
    assert out.shape == (N, X_DIM) and out.dtype == jnp.float32

    # Numerics-matched check (reference using bf16 matmul operands, f32 accumulation).
    ref_bf16 = densenet_reference(params, inputs, steps, noise_levels,
                                  matmul_dtype=jnp.bfloat16)
    assert jnp.allclose(out, ref_bf16, atol=2e-3, rtol=2e-3)

    # Module-semantics check against the pure-f32 PyTorch-mirroring reference
    # (tolerance loosened because the kernel's matmuls use bf16 operands).
    ref_f32 = densenet_reference(params, inputs, steps, noise_levels)
    assert jnp.allclose(out, ref_f32, atol=5e-2, rtol=5e-2)

    print("KERNEL_OK")
</pallas_src>

<mosaic_0001>
module attributes {stable_mosaic.version = 11 : i64} {
  func.func @_densenet_kernel(%arg0: i32, %arg1: memref<3x128xf32, #tpu.memory_space<vmem>>, %arg2: memref<128x14xf32, #tpu.memory_space<vmem>>, %arg3: memref<72x128xbf16, #tpu.memory_space<vmem>>, %arg4: memref<7x128x64xbf16, #tpu.memory_space<vmem>>, %arg5: memref<2x128xf32, #tpu.memory_space<vmem>>) attributes {dimension_semantics = [#tpu.dimension_semantics<parallel>], iteration_bounds = array<i64: 1>, scalar_prefetch = 0 : i64, scratch_operands = 0 : i64, tpu.core_type = #tpu.core_type<tc>, window_params = [{transform_indices = @transform_0, window_bounds = array<i64: 3, 128>}, {pipeline_mode = #tpu.pipeline_mode<synchronous>, transform_indices = @transform_1, window_bounds = array<i64: 128, 14>}, {pipeline_mode = #tpu.pipeline_mode<synchronous>, transform_indices = @transform_2, window_bounds = array<i64: 72, 128>}, {pipeline_mode = #tpu.pipeline_mode<synchronous>, transform_indices = @transform_3, window_bounds = array<i64: 7, 128, 64>}, {transform_indices = @transform_4, window_bounds = array<i64: 2, 128>}]} {
    %c0 = arith.constant 0 : index
    %c0_0 = arith.constant 0 : index
    %0 = vector.load %arg1[%c0, %c0_0] : memref<3x128xf32, #tpu.memory_space<vmem>>, vector<1x128xf32>
    %c1 = arith.constant 1 : index
    %c0_1 = arith.constant 0 : index
    %1 = vector.load %arg1[%c1, %c0_1] : memref<3x128xf32, #tpu.memory_space<vmem>>, vector<2x128xf32>
    %c0_2 = arith.constant 0 : index
    %c7 = arith.constant 7 : index
    %2 = vector.load %arg2[%c0_2, %c7] : memref<128x14xf32, #tpu.memory_space<vmem>>, vector<64x1xf32>
    %c0_3 = arith.constant 0 : index
    %c8 = arith.constant 8 : index
    %3 = vector.load %arg2[%c0_3, %c8] : memref<128x14xf32, #tpu.memory_space<vmem>>, vector<64x1xf32>
    %c0_4 = arith.constant 0 : index
    %c9 = arith.constant 9 : index
    %4 = vector.load %arg2[%c0_4, %c9] : memref<128x14xf32, #tpu.memory_space<vmem>>, vector<64x1xf32>
    %c0_5 = arith.constant 0 : index
    %c10 = arith.constant 10 : index
    %5 = vector.load %arg2[%c0_5, %c10] : memref<128x14xf32, #tpu.memory_space<vmem>>, vector<64x1xf32>
    %c0_6 = arith.constant 0 : index
    %c11 = arith.constant 11 : index
    %6 = vector.load %arg2[%c0_6, %c11] : memref<128x14xf32, #tpu.memory_space<vmem>>, vector<2x1xf32>
    %c0_7 = arith.constant 0 : index
    %c12 = arith.constant 12 : index
    %7 = vector.load %arg2[%c0_7, %c12] : memref<128x14xf32, #tpu.memory_space<vmem>>, vector<16x1xf32>
    %c0_8 = arith.constant 0 : index
    %c13 = arith.constant 13 : index
    %8 = vector.load %arg2[%c0_8, %c13] : memref<128x14xf32, #tpu.memory_space<vmem>>, vector<16x1xf32>
    %9 = vector.broadcast %7 : vector<16x1xf32> to vector<16x128xf32>
    %10 = vector.broadcast %0 : vector<1x128xf32> to vector<16x128xf32>
    %11 = arith.mulf %9, %10 : vector<16x128xf32>
    %12 = vector.broadcast %8 : vector<16x1xf32> to vector<16x128xf32>
    %13 = arith.addf %11, %12 : vector<16x128xf32>
    %14 = math.cos %13 : vector<16x128xf32>
    %c0_9 = arith.constant 0 : index
    %c0_10 = arith.constant 0 : index
    %15 = vector.load %arg3[%c0_9, %c0_10] : memref<72x128xbf16, #tpu.memory_space<vmem>>, vector<64x16xbf16>
    %16 = arith.truncf %14 : vector<16x128xf32> to vector<16x128xbf16>
    %cst = arith.constant dense<0.000000e+00> : vector<64x128xf32>
    %17 = tpu.matmul %15, %16, %cst {dimension_numbers = #tpu.dot_dimension_numbers<[1], [0], [0], [1], [0, 0, 1, 1], [], []>} : vector<64x16xbf16>, vector<16x128xbf16>, vector<64x128xf32> -> vector<64x128xf32>
    %18 = vector.broadcast %2 : vector<64x1xf32> to vector<64x128xf32>
    %19 = arith.addf %17, %18 : vector<64x128xf32>
    %cst_11 = arith.constant 0.000000e+00 : f32
    %20 = vector.broadcast %cst_11 : f32 to vector<64x128xf32>
    %21 = arith.cmpf oge, %19, %20 : vector<64x128xf32>
    %cst_12 = arith.constant 0.00999999977 : f32
    %22 = vector.broadcast %cst_12 : f32 to vector<64x128xf32>
    %23 = arith.mulf %22, %19 : vector<64x128xf32>
    %24 = arith.select %21, %19, %23 : vector<64x128xi1>, vector<64x128xf32>
    %25 = vector.extract_strided_slice %1 {offsets = [0, 0], sizes = [1, 128], strides = [1, 1]} : vector<2x128xf32> to vector<1x128xf32>
    %26 = vector.broadcast %4 : vector<64x1xf32> to vector<64x128xf32>
    %27 = vector.broadcast %25 : vector<1x128xf32> to vector<64x128xf32>
    %28 = arith.mulf %26, %27 : vector<64x128xf32>
    %29 = vector.extract_strided_slice %1 {offsets = [1, 0], sizes = [1, 128], strides = [1, 1]} : vector<2x128xf32> to vector<1x128xf32>
    %30 = vector.broadcast %5 : vector<64x1xf32> to vector<64x128xf32>
    %31 = vector.broadcast %29 : vector<1x128xf32> to vector<64x128xf32>
    %32 = arith.mulf %30, %31 : vector<64x128xf32>
    %33 = arith.addf %28, %32 : vector<64x128xf32>
    %34 = vector.broadcast %3 : vector<64x1xf32> to vector<64x128xf32>
    %35 = arith.addf %33, %34 : vector<64x128xf32>
    %cst_13 = arith.constant 0.000000e+00 : f32
    %36 = vector.broadcast %cst_13 : f32 to vector<64x128xf32>
    %37 = arith.cmpf oge, %35, %36 : vector<64x128xf32>
    %cst_14 = arith.constant 0.00999999977 : f32
    %38 = vector.broadcast %cst_14 : f32 to vector<64x128xf32>
    %39 = arith.mulf %38, %35 : vector<64x128xf32>
    %40 = arith.select %37, %35, %39 : vector<64x128xi1>, vector<64x128xf32>
    %41 = arith.addf %24, %40 : vector<64x128xf32>
    %c0_15 = arith.constant 0 : index
    %c0_16 = arith.constant 0 : index
    %c0_17 = arith.constant 0 : index
    %42 = vector.load %arg4[%c0_15, %c0_16, %c0_17] : memref<7x128x64xbf16, #tpu.memory_space<vmem>>, vector<1x128x64xbf16>
    %43 = vector.shape_cast %42 : vector<1x128x64xbf16> to vector<128x64xbf16>
    %44 = arith.truncf %41 : vector<64x128xf32> to vector<64x128xbf16>
    %cst_18 = arith.constant dense<0.000000e+00> : vector<128x128xf32>
    %45 = tpu.matmul %43, %44, %cst_18 {dimension_numbers = #tpu.dot_dimension_numbers<[1], [0], [0], [1], [0, 0, 1, 1], [], []>} : vector<128x64xbf16>, vector<64x128xbf16>, vector<128x128xf32> -> vector<128x128xf32>
    %c0_19 = arith.constant 0 : index
    %c0_20 = arith.constant 0 : index
    %46 = vector.load %arg2[%c0_19, %c0_20] : memref<128x14xf32, #tpu.memory_space<vmem>>, vector<128x1xf32>
    %47 = vector.broadcast %46 : vector<128x1xf32> to vector<128x128xf32>
    %48 = arith.addf %45, %47 : vector<128x128xf32>
    %49 = vector.extract_strided_slice %48 {offsets = [0, 0], sizes = [64, 128], strides = [1, 1]} : vector<128x128xf32> to vector<64x128xf32>
    %cst_21 = arith.constant 0.000000e+00 : f32
    %50 = vector.broadcast %cst_21 : f32 to vector<64x128xf32>
    %51 = arith.cmpf oge, %49, %50 : vector<64x128xf32>
    %cst_22 = arith.constant 0.00999999977 : f32
    %52 = vector.broadcast %cst_22 : f32 to vector<64x128xf32>
    %53 = arith.mulf %52, %49 : vector<64x128xf32>
    %54 = arith.select %51, %49, %53 : vector<64x128xi1>, vector<64x128xf32>
    %c1_23 = arith.constant 1 : index
    %c0_24 = arith.constant 0 : index
    %c0_25 = arith.constant 0 : index
    %55 = vector.load %arg4[%c1_23, %c0_24, %c0_25] : memref<7x128x64xbf16, #tpu.memory_space<vmem>>, vector<1x128x64xbf16>
    %56 = vector.shape_cast %55 : vector<1x128x64xbf16> to vector<128x64xbf16>
    %57 = arith.truncf %54 : vector<64x128xf32> to vector<64x128xbf16>
    %cst_26 = arith.constant dense<0.000000e+00> : vector<128x128xf32>
    %58 = tpu.matmul %56, %57, %cst_26 {dimension_numbers = #tpu.dot_dimension_numbers<[1], [0], [0], [1], [0, 0, 1, 1], [], []>} : vector<128x64xbf16>, vector<64x128xbf16>, vector<128x128xf32> -> vector<128x128xf32>
    %c0_27 = arith.constant 0 : index
    %c1_28 = arith.constant 1 : index
    %59 = vector.load %arg2[%c0_27, %c1_28] : memref<128x14xf32, #tpu.memory_space<vmem>>, vector<128x1xf32>
    %60 = vector.broadcast %59 : vector<128x1xf32> to vector<128x128xf32>
    %61 = arith.addf %58, %60 : vector<128x128xf32>
    %62 = vector.extract_strided_slice %61 {offsets = [0, 0], sizes = [64, 128], strides = [1, 1]} : vector<128x128xf32> to vector<64x128xf32>
    %c2 = arith.constant 2 : index
    %c0_29 = arith.constant 0 : index
    %c0_30 = arith.constant 0 : index
    %63 = vector.load %arg4[%c2, %c0_29, %c0_30] : memref<7x128x64xbf16, #tpu.memory_space<vmem>>, vector<1x128x64xbf16>
    %64 = vector.shape_cast %63 : vector<1x128x64xbf16> to vector<128x64xbf16>
    %65 = arith.truncf %62 : vector<64x128xf32> to vector<64x128xbf16>
    %cst_31 = arith.constant dense<0.000000e+00> : vector<128x128xf32>
    %66 = tpu.matmul %64, %65, %cst_31 {dimension_numbers = #tpu.dot_dimension_numbers<[1], [0], [0], [1], [0, 0, 1, 1], [], []>} : vector<128x64xbf16>, vector<64x128xbf16>, vector<128x128xf32> -> vector<128x128xf32>
    %c0_32 = arith.constant 0 : index
    %c2_33 = arith.constant 2 : index
    %67 = vector.load %arg2[%c0_32, %c2_33] : memref<128x14xf32, #tpu.memory_space<vmem>>, vector<128x1xf32>
    %68 = vector.broadcast %67 : vector<128x1xf32> to vector<128x128xf32>
    %69 = arith.addf %66, %68 : vector<128x128xf32>
    %70 = vector.extract_strided_slice %69 {offsets = [0, 0], sizes = [64, 128], strides = [1, 1]} : vector<128x128xf32> to vector<64x128xf32>
    %71 = vector.extract_strided_slice %69 {offsets = [64, 0], sizes = [64, 128], strides = [1, 1]} : vector<128x128xf32> to vector<64x128xf32>
    %cst_34 = arith.constant 0.000000e+00 : f32
    %72 = vector.broadcast %cst_34 : f32 to vector<64x128xf32>
    %73 = arith.cmpf oge, %71, %72 : vector<64x128xf32>
    %cst_35 = arith.constant 0.00999999977 : f32
    %74 = vector.broadcast %cst_35 : f32 to vector<64x128xf32>
    %75 = arith.mulf %74, %71 : vector<64x128xf32>
    %76 = arith.select %73, %71, %75 : vector<64x128xi1>, vector<64x128xf32>
    %77 = arith.addf %70, %76 : vector<64x128xf32>
    %c3 = arith.constant 3 : index
    %c0_36 = arith.constant 0 : index
    %c0_37 = arith.constant 0 : index
    %78 = vector.load %arg4[%c3, %c0_36, %c0_37] : memref<7x128x64xbf16, #tpu.memory_space<vmem>>, vector<1x128x64xbf16>
    %79 = vector.shape_cast %78 : vector<1x128x64xbf16> to vector<128x64xbf16>
    %80 = arith.truncf %77 : vector<64x128xf32> to vector<64x128xbf16>
    %cst_38 = arith.constant dense<0.000000e+00> : vector<128x128xf32>
    %81 = tpu.matmul %79, %80, %cst_38 {dimension_numbers = #tpu.dot_dimension_numbers<[1], [0], [0], [1], [0, 0, 1, 1], [], []>} : vector<128x64xbf16>, vector<64x128xbf16>, vector<128x128xf32> -> vector<128x128xf32>
    %c0_39 = arith.constant 0 : index
    %c3_40 = arith.constant 3 : index
    %82 = vector.load %arg2[%c0_39, %c3_40] : memref<128x14xf32, #tpu.memory_space<vmem>>, vector<128x1xf32>
    %83 = vector.broadcast %82 : vector<128x1xf32> to vector<128x128xf32>
    %84 = arith.addf %81, %83 : vector<128x128xf32>
    %85 = vector.extract_strided_slice %84 {offsets = [0, 0], sizes = [64, 128], strides = [1, 1]} : vector<128x128xf32> to vector<64x128xf32>
    %86 = vector.extract_strided_slice %84 {offsets = [64, 0], sizes = [64, 128], strides = [1, 1]} : vector<128x128xf32> to vector<64x128xf32>
    %cst_41 = arith.constant 0.000000e+00 : f32
    %87 = vector.broadcast %cst_41 : f32 to vector<64x128xf32>
    %88 = arith.cmpf oge, %86, %87 : vector<64x128xf32>
    %cst_42 = arith.constant 0.00999999977 : f32
    %89 = vector.broadcast %cst_42 : f32 to vector<64x128xf32>
    %90 = arith.mulf %89, %86 : vector<64x128xf32>
    %91 = arith.select %88, %86, %90 : vector<64x128xi1>, vector<64x128xf32>
    %92 = arith.addf %85, %91 : vector<64x128xf32>
    %c4 = arith.constant 4 : index
    %c0_43 = arith.constant 0 : index
    %c0_44 = arith.constant 0 : index
    %93 = vector.load %arg4[%c4, %c0_43, %c0_44] : memref<7x128x64xbf16, #tpu.memory_space<vmem>>, vector<1x128x64xbf16>
    %94 = vector.shape_cast %93 : vector<1x128x64xbf16> to vector<128x64xbf16>
    %95 = arith.truncf %92 : vector<64x128xf32> to vector<64x128xbf16>
    %cst_45 = arith.constant dense<0.000000e+00> : vector<128x128xf32>
    %96 = tpu.matmul %94, %95, %cst_45 {dimension_numbers = #tpu.dot_dimension_numbers<[1], [0], [0], [1], [0, 0, 1, 1], [], []>} : vector<128x64xbf16>, vector<64x128xbf16>, vector<128x128xf32> -> vector<128x128xf32>
    %c0_46 = arith.constant 0 : index
    %c4_47 = arith.constant 4 : index
    %97 = vector.load %arg2[%c0_46, %c4_47] : memref<128x14xf32, #tpu.memory_space<vmem>>, vector<128x1xf32>
    %98 = vector.broadcast %97 : vector<128x1xf32> to vector<128x128xf32>
    %99 = arith.addf %96, %98 : vector<128x128xf32>
    %100 = vector.extract_strided_slice %99 {offsets = [0, 0], sizes = [64, 128], strides = [1, 1]} : vector<128x128xf32> to vector<64x128xf32>
    %101 = vector.extract_strided_slice %99 {offsets = [64, 0], sizes = [64, 128], strides = [1, 1]} : vector<128x128xf32> to vector<64x128xf32>
    %cst_48 = arith.constant 0.000000e+00 : f32
    %102 = vector.broadcast %cst_48 : f32 to vector<64x128xf32>
    %103 = arith.cmpf oge, %101, %102 : vector<64x128xf32>
    %cst_49 = arith.constant 0.00999999977 : f32
    %104 = vector.broadcast %cst_49 : f32 to vector<64x128xf32>
    %105 = arith.mulf %104, %101 : vector<64x128xf32>
    %106 = arith.select %103, %101, %105 : vector<64x128xi1>, vector<64x128xf32>
    %107 = arith.addf %100, %106 : vector<64x128xf32>
    %c5 = arith.constant 5 : index
    %c0_50 = arith.constant 0 : index
    %c0_51 = arith.constant 0 : index
    %108 = vector.load %arg4[%c5, %c0_50, %c0_51] : memref<7x128x64xbf16, #tpu.memory_space<vmem>>, vector<1x128x64xbf16>
    %109 = vector.shape_cast %108 : vector<1x128x64xbf16> to vector<128x64xbf16>
    %110 = arith.truncf %107 : vector<64x128xf32> to vector<64x128xbf16>
    %cst_52 = arith.constant dense<0.000000e+00> : vector<128x128xf32>
    %111 = tpu.matmul %109, %110, %cst_52 {dimension_numbers = #tpu.dot_dimension_numbers<[1], [0], [0], [1], [0, 0, 1, 1], [], []>} : vector<128x64xbf16>, vector<64x128xbf16>, vector<128x128xf32> -> vector<128x128xf32>
    %c0_53 = arith.constant 0 : index
    %c5_54 = arith.constant 5 : index
    %112 = vector.load %arg2[%c0_53, %c5_54] : memref<128x14xf32, #tpu.memory_space<vmem>>, vector<128x1xf32>
    %113 = vector.broadcast %112 : vector<128x1xf32> to vector<128x128xf32>
    %114 = arith.addf %111, %113 : vector<128x128xf32>
    %115 = vector.extract_strided_slice %114 {offsets = [0, 0], sizes = [64, 128], strides = [1, 1]} : vector<128x128xf32> to vector<64x128xf32>
    %116 = vector.extract_strided_slice %114 {offsets = [64, 0], sizes = [64, 128], strides = [1, 1]} : vector<128x128xf32> to vector<64x128xf32>
    %cst_55 = arith.constant 0.000000e+00 : f32
    %117 = vector.broadcast %cst_55 : f32 to vector<64x128xf32>
    %118 = arith.cmpf oge, %116, %117 : vector<64x128xf32>
    %cst_56 = arith.constant 0.00999999977 : f32
    %119 = vector.broadcast %cst_56 : f32 to vector<64x128xf32>
    %120 = arith.mulf %119, %116 : vector<64x128xf32>
    %121 = arith.select %118, %116, %120 : vector<64x128xi1>, vector<64x128xf32>
    %122 = arith.addf %115, %121 : vector<64x128xf32>
    %c6 = arith.constant 6 : index
    %c0_57 = arith.constant 0 : index
    %c0_58 = arith.constant 0 : index
    %123 = vector.load %arg4[%c6, %c0_57, %c0_58] : memref<7x128x64xbf16, #tpu.memory_space<vmem>>, vector<1x128x64xbf16>
    %124 = vector.shape_cast %123 : vector<1x128x64xbf16> to vector<128x64xbf16>
    %125 = arith.truncf %122 : vector<64x128xf32> to vector<64x128xbf16>
    %cst_59 = arith.constant dense<0.000000e+00> : vector<128x128xf32>
    %126 = tpu.matmul %124, %125, %cst_59 {dimension_numbers = #tpu.dot_dimension_numbers<[1], [0], [0], [1], [0, 0, 1, 1], [], []>} : vector<128x64xbf16>, vector<64x128xbf16>, vector<128x128xf32> -> vector<128x128xf32>
    %c0_60 = arith.constant 0 : index
    %c6_61 = arith.constant 6 : index
    %127 = vector.load %arg2[%c0_60, %c6_61] : memref<128x14xf32, #tpu.memory_space<vmem>>, vector<128x1xf32>
    %128 = vector.broadcast %127 : vector<128x1xf32> to vector<128x128xf32>
    %129 = arith.addf %126, %128 : vector<128x128xf32>
    %cst_62 = arith.constant 0.000000e+00 : f32
    %130 = vector.broadcast %cst_62 : f32 to vector<128x128xf32>
    %131 = arith.cmpf oge, %129, %130 : vector<128x128xf32>
    %cst_63 = arith.constant 0.00999999977 : f32
    %132 = vector.broadcast %cst_63 : f32 to vector<128x128xf32>
    %133 = arith.mulf %132, %129 : vector<128x128xf32>
    %134 = arith.select %131, %129, %133 : vector<128x128xi1>, vector<128x128xf32>
    %c64 = arith.constant 64 : index
    %c0_64 = arith.constant 0 : index
    %135 = vector.load %arg3[%c64, %c0_64] : memref<72x128xbf16, #tpu.memory_space<vmem>>, vector<8x128xbf16>
    %136 = arith.truncf %134 : vector<128x128xf32> to vector<128x128xbf16>
    %cst_65 = arith.constant dense<0.000000e+00> : vector<8x128xf32>
    %137 = tpu.matmul %135, %136, %cst_65 {dimension_numbers = #tpu.dot_dimension_numbers<[1], [0], [0], [1], [0, 0, 1, 1], [], []>} : vector<8x128xbf16>, vector<128x128xbf16>, vector<8x128xf32> -> vector<8x128xf32>
    %138 = vector.extract_strided_slice %137 {offsets = [0, 0], sizes = [2, 128], strides = [1, 1]} : vector<8x128xf32> to vector<2x128xf32>
    %139 = vector.broadcast %6 : vector<2x1xf32> to vector<2x128xf32>
    %140 = arith.addf %138, %139 : vector<2x128xf32>
    %141 = arith.addf %140, %1 : vector<2x128xf32>
    %c0_66 = arith.constant 0 : index
    %c0_67 = arith.constant 0 : index
    %142 = vector.load %arg5[%c0_66, %c0_67] : memref<2x128xf32, #tpu.memory_space<vmem>>, vector<2x128xf32>
    tpu.vector_store %arg5[%c0_66, %c0_67], %141 {strides = array<i32>} : memref<2x128xf32, #tpu.memory_space<vmem>>, vector<2x128xf32>,
    return
  }
  func.func @transform_0(%arg0: i32) -> (i32, i32) {
    %c0_i32 = arith.constant 0 : i32
    %c0_i32_0 = arith.constant 0 : i32
    return %c0_i32, %arg0 : i32, i32
  }
  func.func @transform_1(%arg0: i32) -> (i32, i32) {
    %c0_i32 = arith.constant 0 : i32
    %c0_i32_0 = arith.constant 0 : i32
    %c0_i32_1 = arith.constant 0 : i32
    return %c0_i32, %c0_i32_0 : i32, i32
  }
  func.func @transform_2(%arg0: i32) -> (i32, i32) {
    %c0_i32 = arith.constant 0 : i32
    %c0_i32_0 = arith.constant 0 : i32
    %c0_i32_1 = arith.constant 0 : i32
    return %c0_i32, %c0_i32_0 : i32, i32
  }
  func.func @transform_3(%arg0: i32) -> (i32, i32, i32) {
    %c0_i32 = arith.constant 0 : i32
    %c0_i32_0 = arith.constant 0 : i32
    %c0_i32_1 = arith.constant 0 : i32
    %c0_i32_2 = arith.constant 0 : i32
    return %c0_i32, %c0_i32_0, %c0_i32_1 : i32, i32, i32
  }
  func.func @transform_4(%arg0: i32) -> (i32, i32) {
    %c0_i32 = arith.constant 0 : i32
    %c0_i32_0 = arith.constant 0 : i32
    return %c0_i32, %arg0 : i32, i32
  }
}

</mosaic_0001>

<bundles_post_ra>
// kernel: tpu_custom_call.1
= control target key start
LH: loop header
LB: loop body
LE: loop exit
PB: predicated region body
PF: predicated region fallthrough
CT: control target
= control target key end

     0   :  { %v2870_v1 = vmov 13   ;;  %v2871_v2 = vmov 12   ;;  %s3916_s0 = inlined_call_operand.vmem [shape: f32[3,128], index: 0, kind: input, shape index: {}]   ;;  %s3917_s1 = inlined_call_operand.vmem [shape: f32[128,14], index: 1, kind: input, shape index: {}]   ;;  %s3918_s2 = inlined_call_operand.vmem [shape: bf16[72,128], index: 2, kind: input, shape index: {}]   ;;  %s3919_s3 = inlined_call_operand.vmem [shape: bf16[7,128,64], index: 3, kind: input, shape index: {}]   ;;  %s3920_s4 = inlined_call_operand.hbm [shape: f32[2,128], index: 4, kind: output, shape index: {}]  }
   0x1   :  { %v2919_v0 = vld [vmem:[%s3917_s1] sm:$0xff]  ;;  %2772 = vset.pattern.permute.xlu1 %v2870_v1  ;;  %2771 = vset.pattern.permute.xlu0 %v2871_v2 }
   0x2   :  { %9 = vsyncpa [#allocation3], 0  ;;  %44 = vperm.xlu1 %2772, %v2919_v0   ;;  %32 = vperm.xlu0 %2771, %v2919_v0   ;;  %v2926_v3 = vld [vmem:[%s3917_s1 + $0x8] sm:$0xff]  ;;  %v2872_v4 = vmov 10   ;;  %v2934_v5 = vld [vmem:[%s3917_s1 + $0x38] sm:$0xff]  ;;  %v2873_v7 = vmov 9  }
   0x3   :  { %v2939_v6 = vld [vmem:[%s3917_s1 + $0x30] sm:$0xff]  ;;  %2773 = vset.pattern.permute.xlu2 %v2873_v7  ;;  %v2947_v8 = vld [vmem:[%s3917_s1 + $0x20] sm:$0xff]  ;;  %v2874_v9 = vmov 7   ;;  %v2974_v26 = vld [vmem:[%s3917_s1 + $0x18] sm:$0xff]  ;;  %v2875_v36 = vmov 683565275  }
   0x4   :  { %519 = vperm.xlu2 %2773, %v2939_v6   ;;  %v2825_v10 = vld [vmem:[%s3916_s0] ss:$0 sm:$0xff]  ;;  %v2876_v38 = vmov 2475754826   ;;  %v2877_v40 = vmov 2131351028  }
   0x5   :  { %v2878_v42 = vmov 2102212464   ;;  %v2879_v47 = vmov 920167782   ;;  %v2880_v49 = vmov 8   ;;  %v3001_v57 = vld [vmem:[%s3917_s1 + $0x28] sm:$0xff] }
   0x6   :  { %v2881_v52 = vmov 1326507024   ;;  %s2890_s9 = smov [#allocation2]   ;;  %s2279_s13 = sshll.u32 %s3920_s4, 4  ;;  %s2280_s13 = int_to_ptr.hbm [resolvable:$true] %s2279_s13 }
   0x7   :  { %s2277_s10 = sshll.u32 %s2890_s9, 4  ;;  %s2278_s10 = int_to_ptr.vmem [resolvable:$true] %s2277_s10 }
   0xa   :  { %48 = vperm.xlu1 %2772, %v2926_v3   ;;  %37 = vperm.xlu0 %2771, %v2926_v3  }
   0xc   :  { %523 = vperm.xlu2 %2773, %v2934_v5  }
  0x12   :  { %2774 = vset.pattern.permute.xlu1 %v2872_v4  ;;  %2782 = vset.pattern.permute.xlu0 %v2874_v9 }
  0x13   :  { %564 = vperm.xlu1 %2774, %v2934_v5   ;;  %390 = vperm.xlu0 %2782, %v2947_v8  }
  0x14   :  { %2775 = vset.pattern.permute.xlu2 %v2874_v9 }
  0x15   :  { %400 = vperm.xlu2 %2775, %v2939_v6  }
  0x1b   :  { %2776 = vset.pattern.permute.xlu1 %v2874_v9  ;;  %2783 = vset.pattern.permute.xlu0 %v2872_v4 }
  0x1c   :  { %405 = vperm.xlu1 %2776, %v2934_v5   ;;  %560 = vperm.xlu0 %2783, %v2939_v6  }
  0x1d   :  { %2777 = vset.pattern.permute.xlu2 %v2873_v7 }
  0x1e   :  { %511 = vperm.xlu2 %2777, %v2947_v8  }
  0x24   :  { %2778 = vset.pattern.permute.xlu1 %v2872_v4  ;;  %548 = vperm.xlu0 %2783, %v2974_v26  }
  0x25   :  { %552 = vperm.xlu1 %2778, %v2947_v8  }
  0x26   :  { %2779 = vset.pattern.permute.xlu2 %v2872_v4 }
  0x27   :  { %556 = vperm.xlu2 %2779, %v3001_v57  }
  0x2c   :  { %2788 = vset.pattern.permute.xlu0 %v2873_v7 }
  0x2d   :  { %2780 = vset.pattern.permute.xlu1 %v2880_v49  ;;  %515 = vperm.xlu0 %2788, %v3001_v57  }
  0x2e   :  { %609 = vperm.xlu1 %2780, %v2939_v6  }
  0x2f   :  { %2781 = vset.pattern.permute.xlu2 %v2880_v49 }
  0x30   :  { %613 = vperm.xlu2 %2781, %v2934_v5  }
  0x35   :  { %495 = vperm.xlu0 %2788, %v2919_v0  }
  0x36   :  { %2784 = vset.pattern.permute.xlu1 %v2874_v9 }
  0x37   :  { %395 = vperm.xlu1 %2784, %v3001_v57  }
  0x38   :  { %2785 = vset.pattern.permute.xlu2 %v2873_v7 }
  0x3d   :  { %2797 = vset.pattern.permute.xlu0 %v2880_v49 }
  0x3e   :  { %597 = vperm.xlu0 %2797, %v2974_v26  }
  0x3f   :  { %2786 = vset.pattern.permute.xlu1 %v2873_v7 }
  0x40   :  { %507 = vperm.xlu1 %2786, %v2974_v26  }
  0x48   :  { %2789 = vset.pattern.permute.xlu1 %v2880_v49 }
  0x49   :  { %601 = vperm.xlu1 %2789, %v2947_v8  }
  0x51   :  { %2791 = vset.pattern.permute.xlu1 %v2874_v9 }
  0x74   :  { %v45_v11 = vpop.permute.xlu1 %44  ;;  %v33_v12 = vpop.permute.xlu0 %32 }
  0x75   :  { %v41_v13 = vmul.f32 %v2825_v10, %v33_v12 }
  0x77   :  { %v2955_v14 = vadd.f32 %v45_v11, %v41_v13 }
  0x79   :  { %v56_v15 = vand.u32 2139095040, %v2955_v14  ;;  %v53_v16 = vand.u32 2147483647, %v2955_v14 }
  0x7b   :  { %v57_v17 = vshrl.u32 %v56_v15, 23  ;;  %v60_v18 = vand.u32 8388607, %v53_v16 }
  0x7c   :  { %v38_v19 = vpop.permute.xlu0 %37  ;;  %v49_v23 = vpop.permute.xlu1 %48 }
  0x7d   :  { %v2288_v20 = vadd.s32 4294967169, %v57_v17  ;;  %v42_v21 = vmul.f32 %v2825_v10, %v38_v19  ;;  %v61_v22 = vor.u32 8388608, %v60_v18 }
  0x7f   :  { %v63_v24 = vadd.s32 1, %v2288_v20  ;;  %v2965_v25 = vadd.f32 %v49_v23, %v42_v21  ;;  %v2978_v28 = vshll.u32 %v61_v22, 8 }
  0x81   :  { %vm64_vm0 = vcmp.gt.s32.totalorder %v63_v24, 0  ;;  %v210_v27 = vand.u32 2139095040, %v2965_v25  ;;  %v2981_v35 = vand.u32 65535, %v2978_v28  ;;  %v207_v54 = vand.u32 2147483647, %v2965_v25 }
  0x82   :  { %v65_v29 = vsel %vm64_vm0, %v63_v24, 0  ;;  %v103_v21 = vshrl.u32 %v2978_v28, 16 }
  0x83   :  { %v67_v30 = vand.u32 31, %v65_v29  ;;  %v211_v31 = vshrl.u32 %v210_v27, 23  ;;  %v66_v32 = vshrl.u32 %v65_v29, 5  ;;  %v3014_v19 = vand.u32 8388607, %v207_v54 }
  0x85   :  { %v68_v33 = vsub.s32 32, %v67_v30  ;;  %v2291_v34 = vadd.s32 4294967169, %v211_v31  ;;  %v70_v37 = vshll.u32 %v2875_v36, %v67_v30  ;;  %v73_v39 = vshll.u32 %v2876_v38, %v67_v30 }
  0x86   :  { %v76_v41 = vshll.u32 %v2877_v40, %v67_v30  ;;  %v79_v43 = vshll.u32 %v2878_v42, %v67_v30  ;;  %v82_v48 = vshll.u32 %v2879_v47, %v67_v30  ;;  %vm85_vm2 = vcmp.lt.s32.totalorder %v66_v32, 1 }
  0x87   :  { %v217_v44 = vadd.s32 1, %v2291_v34  ;;  %v71_v45 = vshrl.u32 %v2876_v38, %v68_v33  ;;  %v74_v46 = vshrl.u32 %v2877_v40, %v68_v33  ;;  %v77_v50 = vshrl.u32 %v2878_v42, %v68_v33 }
  0x88   :  { %v80_v51 = vshrl.u32 %v2879_v47, %v68_v33  ;;  %v83_v53 = vshrl.u32 %v2881_v52, %v68_v33  ;;  %v69_v58 = vshrl.u32 %v2875_v36, %v68_v33  ;;  %vm86_vm3 = vcmp.lt.s32.totalorder %v66_v32, 2 }
  0x89   :  { %vm218_vm1 = vcmp.gt.s32.totalorder %v217_v44, 0  ;;  %v72_v55 = vor.u32 %v71_v45, %v70_v37  ;;  %v75_v56 = vor.u32 %v74_v46, %v73_v39  ;;  %v78_v59 = vor.u32 %v77_v50, %v76_v41 }
  0x8a   :  { %v81_v60 = vor.u32 %v80_v51, %v79_v43  ;;  %v84_v61 = vor.u32 %v83_v53, %v82_v48  ;;  %v219_v62 = vsel %vm218_vm1, %v217_v44, 0  ;;  %vm87_vm4 = vcmp.lt.s32.totalorder %v66_v32, 3 }
  0x8b   :  { %vm88_vm5 = vcmp.lt.s32.totalorder %v66_v32, 4  ;;  %v93_v1 = vsel %vm85_vm2, %v72_v55, %v75_v56  ;;  %v97_v6 = vsel %vm85_vm2, %v75_v56, %v78_v59  ;;  %v89_v10 = vsel %vm85_vm2, %v69_v58, %v72_v55 }
  0x8c   :  { %v90_v63 = vsel %vm88_vm5, %v78_v59, 2102212464  ;;  %v94_v2 = vsel %vm88_vm5, %v81_v60, 920167782  ;;  %v98_v13 = vsel %vm88_vm5, %v84_v61, 1326507024 }
  0x8d   :  { %v91_v11 = vsel %vm87_vm4, %v75_v56, %v90_v63  ;;  %v95_v12 = vsel %vm87_vm4, %v78_v59, %v94_v2  ;;  %v3009_v15 = vand.u32 31, %v219_v62  ;;  %v99_v18 = vsel %vm87_vm4, %v81_v60, %v98_v13 }
  0x8e   :  { %v96_v17 = vsel %vm86_vm3, %v93_v1, %v95_v12  ;;  %v100_v20 = vsel %vm86_vm3, %v97_v6, %v99_v18  ;;  %v3019_v24 = vsel %vm86_vm3, %v89_v10, %v91_v11  ;;  %v3021_v30 = vshrl.u32 %v219_v62, 5 }
  0x8f   :  { %v126_v22 = vand.u32 65535, %v96_v17  ;;  %v127_v23 = vshrl.u32 %v96_v17, 16  ;;  %v104_v27 = vand.u32 65535, %v100_v20  ;;  %v105_v29 = vshrl.u32 %v100_v20, 16 }
  0x90   :  { %v3027_v34 = vsub.s32 32, %v3009_v15  ;;  %v215_v39 = vor.u32 8388608, %v3014_v19  ;;  %v146_v44 = vmul.u32 %v2978_v28, %v3019_v24  ;;  %v224_v45 = vshll.u32 %v2875_v36, %v3009_v15 }
  0x91   :  { %v129_v31 = vmul.u32 %v127_v23, %v2981_v35  ;;  %v130_v33 = vmul.u32 %v126_v22, %v103_v21  ;;  %v107_v32 = vmul.u32 %v105_v29, %v2981_v35  ;;  %v108_v37 = vmul.u32 %v104_v27, %v103_v21 }
  0x92   :  { %v128_v41 = vmul.u32 %v126_v22, %v2981_v35  ;;  %v106_v46 = vmul.u32 %v104_v27, %v2981_v35  ;;  %v109_v48 = vmul.u32 %v105_v29, %v103_v21  ;;  %v131_v51 = vmul.u32 %v127_v23, %v103_v21 }
  0x93   :  { %v132_v43 = vshll.u32 %v129_v31, 16  ;;  %v110_v50 = vshll.u32 %v107_v32, 16  ;;  %v133_v53 = vshrl.u32 %v129_v31, 16  ;;  %v134_v55 = vshll.u32 %v130_v33, 16 }
  0x94   :  { %v112_v58 = vshll.u32 %v108_v37, 16  ;;  %v2882_v60 = vmov 0   ;;  %v225_v35 = vshrl.u32 %v2876_v38, %v3027_v34  ;;  %v111_v1 = vshrl.u32 %v107_v32, 16 }
  0x95   :  { %vm136_vm6 = vc.u32 %v128_v41, %v132_v43  ;;  %v138_v56 = vadd.s32 %v132_v43, %v128_v41  ;;  %vm114_vm7 = vc.u32 %v106_v46, %v110_v50  ;;  %v116_v59 = vadd.s32 %v110_v50, %v106_v46  ;;  %2802 = vset.pattern.permute.xlu0 %v2882_v60 }
  0x96   :  { %v137_v61 = vsel %vm136_vm6, 1, %v2882_v60  ;;  %v115_v62 = vsel %vm114_vm7, 1, %v2882_v60  ;;  %v227_v12 = vshll.u32 %v2876_v38, %v3009_v15  ;;  %v228_v13 = vshrl.u32 %v2877_v40, %v3027_v34 }
  0x97   :  { %v139_v63 = vadd.s32 %v137_v61, %v131_v51  ;;  %vm140_vm8 = vc.u32 %v138_v56, %v134_v55  ;;  %v117_v2 = vadd.s32 %v115_v62, %v109_v48  ;;  %vm118_vm9 = vc.u32 %v116_v59, %v112_v58  ;;  %v3112_v58 = vld [vmem:[%s3917_s1 + $0x10] sm:$0xff] }
  0x98   :  { %v141_v6 = vsel %vm140_vm8, 1, %v2882_v60  ;;  %v119_v10 = vsel %vm118_vm9, 1, %v2882_v60  ;;  %v113_v17 = vshrl.u32 %v108_v37, 16  ;;  %v230_v19 = vshll.u32 %v2877_v40, %v3009_v15  ;;  %503 = vperm.xlu2 %2785, %v3112_v58   ;;  %380 = vperm.xlu1 %2791, %v3112_v58  }
  0x99   :  { %v143_v11 = vadd.s32 %v141_v6, %v139_v63  ;;  %v121_v18 = vadd.s32 %v119_v10, %v117_v2  ;;  %v231_v20 = vshrl.u32 %v2878_v42, %v3027_v34  ;;  %v135_v38 = vshrl.u32 %v130_v33, 16 }
  0x9a   :  { %v3058_v22 = vor.u32 %v225_v35, %v224_v45  ;;  %v3060_v23 = vor.u32 %v228_v13, %v227_v12  ;;  %v233_v31 = vshll.u32 %v2878_v42, %v3009_v15  ;;  %v234_v40 = vshrl.u32 %v2879_v47, %v3027_v34 }
  0x9b   :  { %v144_v21 = vadd.s32 %v143_v11, %v133_v53  ;;  %v122_v27 = vadd.s32 %v121_v18, %v111_v1  ;;  %v3062_v29 = vor.u32 %v231_v20, %v230_v19  ;;  %v236_v33 = vshll.u32 %v2879_v47, %v3009_v15 }
  0x9c   :  { %v237_v37 = vshrl.u32 %v2881_v52, %v3027_v34  ;;  %vm239_vm10 = vcmp.lt.s32.totalorder %v3021_v30, 1  ;;  %v3077_v43 = vadd.s32 %v138_v56, %v134_v55  ;;  %v235_v42 = vor.u32 %v234_v40, %v233_v31 }
  0x9d   :  { %v145_v32 = vadd.s32 %v144_v21, %v135_v38  ;;  %v3075_v41 = vadd.s32 %v122_v27, %v113_v17  ;;  %vm242_vm11 = vcmp.lt.s32.totalorder %v3021_v30, 4  ;;  %v247_v47 = vsel %vm239_vm10, %v3058_v22, %v3060_v23 }
  0x9e   :  { %v238_v46 = vor.u32 %v237_v37, %v236_v33  ;;  %v3084_v15 = vshll.u32 %v215_v39, 8  ;;  %vm241_vm13 = vcmp.lt.s32.totalorder %v3021_v30, 3  ;;  %v248_v52 = vsel %vm242_vm11, %v235_v42, 920167782 }
  0x9f   :  { %v149_v45 = vadd.s32 1, %v145_v32  ;;  %vm148_vm12 = vc.u32 %v3075_v41, %v3077_v43  ;;  %v251_v48 = vsel %vm239_vm10, %v3060_v23, %v3062_v29  ;;  %vm240_vm14 = vcmp.lt.s32.totalorder %v3021_v30, 2 }
  0xa0   :  { %v249_v39 = vsel %vm241_vm13, %v3062_v29, %v248_v52  ;;  %v252_v51 = vsel %vm242_vm11, %v238_v46, 1326507024  ;;  %v256_v28 = vand.u32 65535, %v3084_v15  ;;  %v257_v62 = vshrl.u32 %v3084_v15, 16  ;;  %2787 = vset.pattern.permute.xlu2 %v2872_v4  ;;  %2793 = vset.pattern.permute.xlu1 %v2873_v7 }
  0xa1   :  { %v150_v50 = vsel %vm148_vm12, %v149_v45, %v145_v32  ;;  %v250_v55 = vsel %vm240_vm14, %v247_v47, %v249_v39  ;;  %v253_v56 = vsel %vm241_vm13, %v235_v42, %v252_v51  ;;  %v223_v19 = vshrl.u32 %v2875_v36, %v3027_v34  ;;  %544 = vperm.xlu2 %2787, %v3112_v58  }
  0xa2   :  { %v151_v53 = vadd.s32 %v150_v50, %v146_v44  ;;  %v254_v59 = vsel %vm240_vm14, %v251_v48, %v253_v56  ;;  %v280_v24 = vand.u32 65535, %v250_v55  ;;  %v281_v44 = vshrl.u32 %v250_v55, 16  ;;  %499 = vperm.xlu1 %2793, %v2926_v3  }
  0xa3   :  { %v258_v63 = vand.u32 65535, %v254_v59  ;;  %v259_v35 = vshrl.u32 %v254_v59, 16  ;;  %v244_v36 = vsel %vm242_vm11, %v3062_v29, 2102212464  ;;  %v243_v47 = vsel %vm239_vm10, %v223_v19, %v3058_v22 }
  0xa4   :  { %v152_v61 = vadd.s32 536870912, %v151_v53  ;;  %v283_v1 = vmul.u32 %v281_v44, %v256_v28  ;;  %v284_v10 = vmul.u32 %v280_v24, %v257_v62  ;;  %v282_v12 = vmul.u32 %v280_v24, %v256_v28 }
  0xa5   :  { %v261_v6 = vmul.u32 %v259_v35, %v256_v28  ;;  %v262_v11 = vmul.u32 %v258_v63, %v257_v62  ;;  %v260_v8 = vmul.u32 %v258_v63, %v256_v28  ;;  %v263_v20 = vmul.u32 %v259_v35, %v257_v62 }
  0xa6   :  { %v3122_v2 = vshrl.u32 %v152_v61, 30  ;;  %v286_v13 = vshll.u32 %v283_v1, 16  ;;  %v285_v38 = vmul.u32 %v281_v44, %v257_v62  ;;  %v288_v31 = vshll.u32 %v284_v10, 16 }
  0xa7   :  { %v264_v18 = vshll.u32 %v261_v6, 16  ;;  %v266_v40 = vshll.u32 %v262_v11, 16  ;;  %v245_v48 = vsel %vm241_vm13, %v3060_v23, %v244_v36  ;;  %v265_v39 = vshrl.u32 %v261_v6, 16 }
  0xa8   :  { %v154_v17 = vshll.u32 %v3122_v2, 30  ;;  %vm290_vm15 = vc.u32 %v282_v12, %v286_v13  ;;  %v292_v37 = vadd.s32 %v286_v13, %v282_v12  ;;  %v267_v59 = vshrl.u32 %v262_v11, 16 }
  0xa9   :  { %vm268_vm0 = vc.u32 %v260_v8, %v264_v18  ;;  %v270_v27 = vadd.s32 %v264_v18, %v260_v8  ;;  %v291_v33 = vsel %vm290_vm15, 1, %v2882_v60  ;;  %v289_v24 = vshrl.u32 %v284_v10, 16  ;;  %2790 = vset.pattern.permute.xlu2 %v2880_v49 }
  0xaa   :  { %v155_v21 = vsub.s32 %v151_v53, %v154_v17  ;;  %v269_v32 = vsel %vm268_vm0, 1, %v2882_v60  ;;  %v293_v45 = vadd.s32 %v291_v33, %v285_v38  ;;  %vm294_vm3 = vc.u32 %v292_v37, %v288_v31  ;;  %605 = vperm.xlu2 %2790, %v3001_v57   ;;  %2795 = vset.pattern.permute.xlu1 %v2872_v4 }
  0xab   :  { %v271_v34 = vadd.s32 %v269_v32, %v263_v20  ;;  %vm272_vm2 = vc.u32 %v270_v27, %v266_v40  ;;  %v295_v50 = vsel %vm294_vm3, 1, %v2882_v60  ;;  %v287_v53 = vshrl.u32 %v283_v1, 16  ;;  %540 = vperm.xlu1 %2795, %v2926_v3  }
  0xac   :  { %vm156_vm1 = vcmp.lt.s32.totalorder %v155_v21, 0  ;;  %v157_v42 = vsub.s32 0, %v155_v21  ;;  %v273_v29 = vsel %vm272_vm2, 1, %v2882_v60  ;;  %v297_v55 = vadd.s32 %v295_v50, %v293_v45 }
  0xad   :  { %v275_v51 = vadd.s32 %v273_v29, %v271_v34  ;;  %v246_v22 = vsel %vm240_vm14, %v243_v47, %v245_v48  ;;  %v296_v23 = vadd.s32 %v292_v37, %v288_v31  ;;  %v147_v35 = vadd.s32 %v3077_v43, %v3075_v41 }
  0xae   :  { %v158_v46 = vsel %vm156_vm1, %v157_v42, %v155_v21  ;;  %v298_v44 = vadd.s32 %v297_v55, %v287_v53  ;;  %v300_v13 = vmul.u32 %v3084_v15, %v246_v22  ;;  %vm55_vm6 = vcmp.lt.s32.totalorder %v2955_v14, 0 }
  0xaf   :  { %v159_v52 = vclz %v158_v46  ;;  %v276_v28 = vadd.s32 %v275_v51, %v265_v39  ;;  %vm3163_vm7 = vcmp.le.f32.partialorder %v53_v16, 0.7853982  ;;  %vm209_vm10 = vcmp.lt.s32.totalorder %v2965_v25, 0 }
  0xb0   :  { %v299_v63 = vadd.s32 %v298_v44, %v289_v24  ;;  %vm3185_vm11 = vcmp.le.f32.partialorder %v207_v54, 0.7853982  ;;  %vm196_vm2 = vweird.f32 %v2955_v14  ;;  %vm350_vm3 = vweird.f32 %v2965_v25 }
  0xb1   :  { %v2289_v56 = vadd.s32 4294967294, %v159_v52  ;;  %v277_v62 = vadd.s32 %v276_v28, %v267_v59 }
  0xb2   :  { %v303_v10 = vadd.s32 1, %v299_v63  ;;  %2792 = vset.pattern.permute.xlu2 %v2874_v9 }
  0xb3   :  { %vm2290_vm4 = vcmp.lt.s32.totalorder %v2289_v56, 0  ;;  %vm302_vm5 = vc.u32 %v277_v62, %v296_v23  ;;  %385 = vperm.xlu2 %2792, %v2974_v26   ;;  %2798 = vset.pattern.permute.xlu1 %v2874_v9  ;;  %v301_v46 = vadd.s32 %v296_v23, %v277_v62 }
  0xb4   :  { %v162_v61 = vsel %vm2290_vm4, 0, %v2289_v56  ;;  %v304_v17 = vsel %vm302_vm5, %v303_v10, %v299_v63  ;;  %371 = vperm.xlu1 %2798, %v2919_v0   ;;  %vm428_vm4 = vcmask 130048  }
  0xb5   :  { %v163_v1 = vsub.s32 32, %v162_v61  ;;  %v167_v6 = vsub.s32 4294967266, %v162_v61  ;;  %v164_v30 = vshll.u32 %v155_v21, %v162_v61  ;;  %v305_v18 = vadd.s32 %v304_v17, %v300_v13 }
  0xb7   :  { %v165_v11 = vshrl.u32 %v147_v35, %v163_v1  ;;  %v168_v12 = vadd.s32 127, %v167_v6  ;;  %v306_v20 = vadd.s32 536870912, %v305_v18  ;;  %v177_v35 = vsub.s32 4, %v3122_v2 }
  0xb9   :  { %v166_v7 = vor.u32 %v165_v11, %v164_v30  ;;  %v169_v8 = vshll.u32 %v168_v12, 23  ;;  %v3153_v38 = vshrl.u32 %v306_v20, 30  ;;  %v178_v11 = vsel %vm55_vm6, %v177_v35, %v3122_v2 }
  0xbb   :  { %v170_v19 = vor.u32 4788187, %v169_v8  ;;  %v173_v43 = vcvt.s32.f32 %v166_v7  ;;  %v308_v27 = vshll.u32 %v3153_v38, 30  ;;  %2794 = vset.pattern.permute.xlu2 %v2872_v4  ;;  %v331_v12 = vsub.s32 4, %v3153_v38 }
  0xbc   :  { %536 = vperm.xlu2 %2794, %v2919_v0   ;;  %2800 = vset.pattern.permute.xlu1 %v2880_v49  ;;  %v180_v7 = vsel %vm3163_vm7, 0, %v178_v11  ;;  %v391_v11 = vpop.permute.xlu0 %390 }
  0xbd   :  { %v171_v41 = vand.u32 2147483647, %v170_v19  ;;  %v309_v31 = vsub.s32 %v305_v18, %v308_v27  ;;  %585 = vperm.xlu1 %2800, %v2919_v0   ;;  %v332_v20 = vsel %vm209_vm10, %v331_v12, %v3153_v38 }
  0xbf   :  { %v174_v21 = vmul.f32 %v173_v43, %v171_v41  ;;  %vm310_vm8 = vcmp.lt.s32.totalorder %v309_v31, 0  ;;  %v311_v33 = vsub.s32 0, %v309_v31 }
  0xc1   :  { %v175_v15 = vxor.u32 2147483648, %v174_v21  ;;  %v312_v26 = vsel %vm310_vm8, %v311_v33, %v309_v31 }
  0xc2   :  { %v313_v36 = vclz %v312_v26 }
  0xc3   :  { %v176_v32 = vsel %vm55_vm6, %v175_v15, %v174_v21  ;;  %v197_v21 = vand.u32 3, %v180_v7  ;;  %v334_v15 = vsel %vm3185_vm11, 0, %v332_v20 }
  0xc4   :  { %v179_v37 = vsel %vm3163_vm7, %v2955_v14, %v176_v32  ;;  %v2292_v16 = vadd.s32 4294967294, %v313_v36  ;;  %2796 = vset.pattern.permute.xlu2 %v2880_v49 }
  0xc5   :  { %v181_v42 = vmul.f32 %v179_v37, %v179_v37  ;;  %593 = vperm.xlu2 %2796, %v3112_v58   ;;  %2803 = vset.pattern.permute.xlu1 %v2882_v60  ;;  %vm199_vm12 = vcmp.eq.s32.totalorder %v197_v21, 0  ;;  %vm202_vm13 = vcmp.eq.s32.totalorder %v197_v21, 2  ;;  %vm198_vm14 = vcmp.lt.s32.totalorder %v197_v21, 2 }
  0xc6   :  { %vm2293_vm9 = vcmp.lt.s32.totalorder %v2292_v16, 0  ;;  %729 = vperm.xlu1 %2803, %v2934_v5  }
  0xc7   :  { %v189_v34 = vmul.f32 -0.00019511016, %v181_v42  ;;  %v316_v45 = vsel %vm2293_vm9, 0, %v2292_v16  ;;  %v182_v51 = vmul.f32 -0.001358992, %v181_v42 }
  0xc8   :  { %v317_v47 = vsub.s32 32, %v316_v45  ;;  %v321_v52 = vsub.s32 4294967266, %v316_v45  ;;  %v318_v29 = vshll.u32 %v309_v31, %v316_v45 }
  0xc9   :  { %v190_v48 = vadd.f32 0.008332121, %v189_v34  ;;  %v183_v59 = vadd.f32 0.041655596, %v182_v51  ;;  %v565_v51 = vpop.permute.xlu1 %564 }
  0xca   :  { %v319_v50 = vshrl.u32 %v301_v46, %v317_v47  ;;  %v322_v39 = vadd.s32 127, %v321_v52 }
  0xcb   :  { %v191_v4 = vmul.f32 %v190_v48, %v181_v42  ;;  %v184_v61 = vmul.f32 %v183_v59, %v181_v42  ;;  %v2692_v59 = vld [vmem:[%s3918_s2 + $0x10] sm:$0xff] }
  0xcc   :  { %v320_v53 = vor.u32 %v319_v50, %v318_v29  ;;  %v323_v55 = vshll.u32 %v322_v39, 23  ;;  %v520_v29 = vpop.permute.xlu2 %519  ;;  %v20_v50 = vld [vmem:[%s3916_s0 + $0x1] sm:$0x3] }
  0xcd   :  { %v192_v44 = vadd.f32 -0.16666654, %v191_v4  ;;  %2799 = vset.pattern.permute.xlu2 %v2874_v9  ;;  %v185_v1 = vadd.f32 -0.4999988, %v184_v61  ;;  %v3221_v14 = vperm.slane %v20_v50, 0 }
  0xce   :  { %v324_v56 = vor.u32 4788187, %v323_v55  ;;  %v327_v24 = vcvt.s32.f32 %v320_v53  ;;  %375 = vperm.xlu2 %2799, %v2926_v3   ;;  %719 = vperm.xlu1 %2803, %v3001_v57   ;;  %v2691_v53 = vld [vmem:[%s3918_s2 + $0x8] sm:$0xff] }
  0xcf   :  { %v193_v23 = vmul.f32 %v192_v44, %v181_v42  ;;  %v186_v13 = vmul.f32 %v185_v1, %v181_v42  ;;  %v533_v21 = vmul.f32 %v3221_v14, %v520_v29 }
  0xd0   :  { %v325_v28 = vand.u32 2147483647, %v324_v56 }
  0xd1   :  { %v194_v10 = vadd.f32 1.0, %v193_v23  ;;  %v187_v2 = vadd.f32 1.0, %v186_v13  ;;  %v3239_v44 = vpop.permute.xlu1 %405 }
  0xd2   :  { %v328_v22 = vmul.f32 %v327_v24, %v325_v28  ;;  %v2693_v28 = vld [vmem:[%s3918_s2 + $0x18] sm:$0xff] }
  0xd3   :  { %v195_v8 = vmul.f32 %v194_v10, %v179_v37  ;;  %v203_v32 = vxor.u32 2147483648, %v187_v2  ;;  %v351_v37 = vand.u32 3, %v334_v15 }
  0xd4   :  { %v329_v62 = vxor.u32 2147483648, %v328_v22  ;;  %v524_v39 = vpop.permute.xlu2 %523 }
  0xd5   :  { %v200_v27 = vxor.u32 2147483648, %v195_v8  ;;  %vm353_vm15 = vcmp.eq.s32.totalorder %v351_v37, 0  ;;  %vm356_vm0 = vcmp.eq.s32.totalorder %v351_v37, 2  ;;  %vm352_vm1 = vcmp.lt.s32.totalorder %v351_v37, 2 }
  0xd6   :  { %v330_v63 = vsel %vm209_vm10, %v329_v62, %v328_v22  ;;  %2801 = vset.pattern.permute.xlu2 %v2880_v49  ;;  %v534_v55 = vmul.f32 %v3221_v14, %v524_v39 }
  0xd7   :  { %v333_v9 = vsel %vm3185_vm11, %v2965_v25, %v330_v63  ;;  %589 = vperm.xlu2 %2801, %v2926_v3   ;;  %v201_v26 = vsel %vm199_vm12, %v187_v2, %v200_v27  ;;  %v204_v3 = vsel %vm202_vm13, %v203_v32, %v195_v8  ;;  %v3223_v25 = vperm.slane %v20_v50, 1 }
  0xd8   :  { %v335_v6 = vmul.f32 %v333_v9, %v333_v9  ;;  %v205_v16 = vsel %vm198_vm14, %v201_v26, %v204_v3 }
  0xd9   :  { %v206_v47 = vsel %vm196_vm2, nan, %v205_v16  ;;  %v575_v4 = vmul.f32 %v3223_v25, %v565_v51  ;;  %v553_v61 = vpop.permute.xlu1 %552 }
  0xda   :  { %v336_v54 = vmul.f32 -0.001358992, %v335_v6  ;;  %v343_v30 = vmul.f32 -0.00019511016, %v335_v6 }
  0xdb   :  { %v583_v56 = vadd.f32 %v575_v4, %v534_v55 }
  0xdc   :  { %v337_v17 = vadd.f32 0.041655596, %v336_v54  ;;  %v344_v5 = vadd.f32 0.008332121, %v343_v30  ;;  %v401_v24 = vpop.permute.xlu2 %400 }
  0xde   :  { %v338_v18 = vmul.f32 %v337_v17, %v335_v6  ;;  %v345_v19 = vmul.f32 %v344_v5, %v335_v6  ;;  %v561_v5 = vpop.permute.xlu0 %560 }
  0xdf   :  { %2804 = vset.pattern.permute.xlu2 %v2882_v60  ;;  %v2690_v60 = vld [vmem:[%s3918_s2] sm:$0xff]  ;;  %v574_v27 = vmul.f32 %v3223_v25, %v561_v5 }
  0xe0   :  { %v339_v41 = vadd.f32 -0.4999988, %v338_v18  ;;  %v346_v43 = vadd.f32 -0.16666654, %v345_v19 }
  0xe1   :  { %v610_v23 = vpop.permute.xlu1 %609  ;;  %v582_v32 = vadd.f32 %v574_v27, %v533_v21 }
  0xe2   :  { %v340_v31 = vmul.f32 %v339_v41, %v335_v6  ;;  %v347_v40 = vmul.f32 %v346_v43, %v335_v6 }
  0xe4   :  { %v341_v49 = vadd.f32 1.0, %v340_v31  ;;  %v348_v33 = vadd.f32 1.0, %v347_v40  ;;  %v512_v22 = vpop.permute.xlu2 %511  ;;  %v572_v40 = vmul.f32 %v3223_v25, %v553_v61 }
  0xe5   :  { %v531_v31 = vmul.f32 %v3221_v14, %v512_v22 }
  0xe6   :  { %v349_v42 = vmul.f32 %v348_v33, %v333_v9  ;;  %v357_v38 = vxor.u32 2147483648, %v341_v49  ;;  %v549_v19 = vpop.permute.xlu0 %548 }
  0xe7   :  { %v580_v26 = vadd.f32 %v572_v40, %v531_v31 }
  0xe8   :  { %v354_v36 = vxor.u32 2147483648, %v349_v42  ;;  %v358_v45 = vsel %vm356_vm0, %v357_v38, %v349_v42  ;;  %v622_v38 = vadd.f32 %v610_v23, %v582_v32 }
  0xe9   :  { %v396_v63 = vpop.permute.xlu1 %395 }
  0xea   :  { %v355_v34 = vsel %vm353_vm15, %v341_v49, %v354_v36  ;;  %vm630_vm6 = vcmp.ge.f32.partialorder %v622_v38, 0.0 }
  0xeb   :  { %v359_v46 = vsel %vm352_vm1, %v355_v34, %v358_v45 }
  0xec   :  { %v360_v52 = vsel %vm350_vm3, nan, %v359_v46  ;;  %v557_v62 = vpop.permute.xlu2 %556  ;;  %v571_v46 = vmul.f32 %v3223_v25, %v549_v19 }
  0xed   :  { %v369_v48 = vpack.c.bf16 %v360_v52, %v206_v47  ;;  %v573_v49 = vmul.f32 %v3223_v25, %v557_v62  ;;  %v3261_v52 = vld [vmem:[%s3917_s1] sm:$0xff] }
  0xee   :  { %v516_v43 = vpop.permute.xlu0 %515  ;;  %694 = vperm.xlu1 %2803, %v3261_v52  }
  0xef   :  { %448 = vmatpush.bf16.msra.mxu0 %v369_v48  ;;  %v532_v33 = vmul.f32 %v3221_v14, %v516_v43 }
  0xf1   :  { %v508_v9 = vpop.permute.xlu1 %507  ;;  %v581_v47 = vadd.f32 %v573_v49, %v532_v33 }
  0xf2   :  { %2310 = vmatmul.msk.bf16.vlgmr.msra.gmra.mxu0 %vm428_vm4, %v2690_v60  ;;  %v530_v60 = vmul.f32 %v3221_v14, %v508_v9 }
  0xf4   :  { %v614_v0 = vpop.permute.xlu2 %613  ;;  %v579_v61 = vadd.f32 %v571_v46, %v530_v60 }
  0xf5   :  { %v623_v37 = vadd.f32 %v614_v0, %v583_v56 }
  0xf6   :  { %v496_v42 = vpop.permute.xlu0 %495 }
  0xf7   :  { %vm631_vm5 = vcmp.ge.f32.partialorder %v623_v37, 0.0  ;;  %v639_v48 = vmul.f32 0.01, %v623_v37  ;;  %v527_v39 = vmul.f32 %v3221_v14, %v496_v42 }
  0xf9   :  { %v602_v10 = vpop.permute.xlu1 %601  ;;  %v647_v9 = vsel %vm631_vm5, %v623_v37, %v639_v48  ;;  %vm804_vm5 = vcmask 523264  }
  0xfa   :  { %v620_v29 = vadd.f32 %v602_v10, %v580_v26 }
  0xfc   :  { %v504_v35 = vpop.permute.xlu2 %503  ;;  %vm628_vm7 = vcmp.ge.f32.partialorder %v620_v29, 0.0  ;;  %v636_v22 = vmul.f32 0.01, %v620_v29 }
  0xfd   :  { %v529_v3 = vmul.f32 %v3221_v14, %v504_v35 }
  0xfe   :  { %v598_v62 = vpop.permute.xlu0 %597 }
  0xff   :  { %v619_v19 = vadd.f32 %v598_v62, %v579_v61  ;;  %v3300_v61 = vld [vmem:[%s3917_s1 + $0x18] sm:$0xff]  ;;  %v3305_v62 = vld [vmem:[%s3917_s1 + $0x8] sm:$0xff] }
 0x101   :  { %v635_v32 = vmul.f32 0.01, %v619_v19  ;;  %vm627_vm14 = vcmp.ge.f32.partialorder %v619_v19, 0.0 }
 0x102   :  { %2311 = vmatmul.msk.bf16.gmra.mxu0 %vm428_vm4, %v2691_v53  ;;  %v638_v53 = vmul.f32 0.01, %v622_v38 }
 0x104   :  { %v545_v1 = vpop.permute.xlu2 %544  ;;  %v646_v35 = vsel %vm630_vm6, %v622_v38, %v638_v53 }
 0x105   :  { %v570_v36 = vmul.f32 %v3223_v25, %v545_v1 }
 0x107   :  { %v578_v50 = vadd.f32 %v570_v36, %v529_v3  ;;  %v3280_v36 = vld [vmem:[%s3917_s1 + $0x20] sm:$0xff] }
 0x108   :  { %714 = vperm.xlu2 %2804, %v3280_v36  }
 0x10a   :  { %v3247_v13 = vpop.permute.xlu1 %380 }
 0x10c   :  { %v606_v54 = vpop.permute.xlu2 %605 }
 0x110   :  { %704 = vperm.xlu2 %2804, %v3112_v58  }
 0x112   :  { %2312 = vmatmul.msk.bf16.gmra.mxu0 %vm428_vm4, %v2692_v59  ;;  %v621_v59 = vadd.f32 %v606_v54, %v581_v47  ;;  %v643_v47 = vsel %vm627_vm14, %v619_v19, %v635_v32 }
 0x114   :  { %v386_v17 = vpop.permute.xlu2 %385  ;;  %v500_v8 = vpop.permute.xlu1 %499  ;;  %v637_v54 = vmul.f32 0.01, %v621_v59  ;;  %vm629_vm10 = vcmp.ge.f32.partialorder %v621_v59, 0.0 }
 0x115   :  { %v528_v55 = vmul.f32 %v3221_v14, %v500_v8 }
 0x118   :  { %699 = vperm.xlu2 %2804, %v3305_v62  }
 0x11c   :  { %v537_v18 = vpop.permute.xlu2 %536 }
 0x11d   :  { %v541_v2 = vpop.permute.xlu1 %540  ;;  %v568_v4 = vmul.f32 %v3223_v25, %v537_v18 }
 0x11e   :  { %v569_v56 = vmul.f32 %v3223_v25, %v541_v2 }
 0x11f   :  { %v576_v1 = vadd.f32 %v568_v4, %v527_v39 }
 0x120   :  { %v577_v10 = vadd.f32 %v569_v56, %v528_v55 }
 0x122   :  { %2313 = vmatmul.msk.bf16.gmra.mxu0 %vm428_vm4, %v2693_v28 }
 0x124   :  { %v594_v41 = vpop.permute.xlu2 %593 }
 0x126   :  { %v372_v16 = vpop.permute.xlu1 %371 }
 0x12c   :  { %v376_v34 = vpop.permute.xlu2 %375 }
 0x12f   :  { %v586_v5 = vpop.permute.xlu1 %585 }
 0x130   :  { %v616_v21 = vadd.f32 %v586_v5, %v576_v1 }
 0x132   :  { %vm624_vm3 = vcmp.ge.f32.partialorder %v616_v21, 0.0 }
 0x134   :  { %v590_v8 = vpop.permute.xlu2 %589 }
 0x135   :  { %v617_v27 = vadd.f32 %v590_v8, %v577_v10 }
 0x137   :  { %v633_v42 = vmul.f32 0.01, %v617_v27  ;;  %vm625_vm1 = vcmp.ge.f32.partialorder %v617_v27, 0.0 }
 0x139   :  { %v641_v39 = vsel %vm625_vm1, %v617_v27, %v633_v42 }
 0x162   :  { %v715_v5 = vpop.permute.xlu2 %714 }
 0x16f   :  { %v3241_v6 = vpop.f32.mrf.mxu0 }
 0x177   :  { %v3243_v30 = vpop.f32.mrf.mxu0 }
 0x17f   :  { %v3245_v12 = vpop.f32.mrf.mxu0 }
 0x187   :  { %v457_v7 = vpop.f32.mrf.mxu0 }
 0x188   :  { %v458_v25 = vadd.f32 %v457_v7, %v386_v17  ;;  %v453_v17 = vadd.f32 %v3243_v30, %v376_v34  ;;  %v644_v30 = vsel %vm628_vm7, %v620_v29, %v636_v22  ;;  %v632_v34 = vmul.f32 0.01, %v616_v21  ;;  %v2694_v22 = vld [vmem:[%s3919_s3] sm:$0xff] }
 0x18a   :  { %v481_v7 = vmul.f32 0.01, %v458_v25  ;;  %vm473_vm13 = vcmp.ge.f32.partialorder %v458_v25, 0.0  ;;  %v479_v38 = vmul.f32 0.01, %v453_v17  ;;  %vm471_vm2 = vcmp.ge.f32.partialorder %v453_v17, 0.0 }
 0x18b   :  { %v640_v55 = vsel %vm624_vm3, %v616_v21, %v632_v34 }
 0x18c   :  { %v489_v3 = vsel %vm473_vm13, %v458_v25, %v481_v7  ;;  %v730_v25 = vpop.permute.xlu1 %729 }
 0x18d   :  { %v651_v60 = vadd.f32 %v643_v47, %v489_v3 }
 0x18f   :  { %v460_v20 = vpop.f32.mrf.mxu0 }
 0x190   :  { %v461_v23 = vadd.f32 %v460_v20, %v391_v11  ;;  %v456_v11 = vadd.f32 %v3245_v12, %v3247_v13  ;;  %v645_v12 = vsel %vm629_vm10, %v621_v59, %v637_v54  ;;  %v451_v13 = vadd.f32 %v3241_v6, %v372_v16  ;;  %v3285_v6 = vld [vmem:[%s3917_s1 + $0x30] sm:$0xff]  ;;  %v3324_v54 = vld [vmem:[%s3917_s1 + $0x38] sm:$0xff] }
 0x191   :  { %724 = vperm.xlu0 %2802, %v3285_v6  }
 0x192   :  { %v482_v20 = vmul.f32 0.01, %v461_v23  ;;  %vm474_vm12 = vcmp.ge.f32.partialorder %v461_v23, 0.0  ;;  %v480_v49 = vmul.f32 0.01, %v456_v11  ;;  %vm472_vm15 = vcmp.ge.f32.partialorder %v456_v11, 0.0 }
 0x193   :  { %vm470_vm4 = vcmp.ge.f32.partialorder %v451_v13, 0.0 }
 0x194   :  { %v490_v33 = vsel %vm474_vm12, %v461_v23, %v482_v20  ;;  %v488_v46 = vsel %vm472_vm15, %v456_v11, %v480_v49  ;;  %v2695_v23 = vld [vmem:[%s3919_s3 + $0x8] sm:$0xff]  ;;  %v705_v11 = vpop.permute.xlu2 %704  ;;  %v720_v20 = vpop.permute.xlu1 %719 }
 0x195   :  { %v652_v16 = vadd.f32 %v644_v30, %v490_v33 }
 0x197   :  { %v462_v15 = vpop.f32.mrf.mxu0 }
 0x198   :  { %v463_v28 = vadd.f32 %v462_v15, %v396_v63 }
 0x199   :  { %709 = vperm.xlu0 %2802, %v3300_v61  }
 0x19a   :  { %v483_v18 = vmul.f32 0.01, %v463_v28  ;;  %vm475_vm9 = vcmp.ge.f32.partialorder %v463_v28, 0.0 }
 0x19c   :  { %v695_v49 = vpop.permute.xlu1 %694 }
 0x19f   :  { %v465_v45 = vpop.f32.mrf.mxu0 }
 0x1a0   :  { %v466_v51 = vadd.f32 %v465_v45, %v401_v24  ;;  %v618_v24 = vadd.f32 %v594_v41, %v578_v50  ;;  %v478_v45 = vmul.f32 0.01, %v451_v13  ;;  %v487_v50 = vsel %vm471_vm2, %v453_v17, %v479_v38 }
 0x1a1   :  { %v649_v56 = vadd.f32 %v641_v39, %v487_v50  ;;  %v2702_v50 = vld [vmem:[%s3919_s3 + $0x40] sm:$0xff]  ;;  %v2703_v39 = vld [vmem:[%s3919_s3 + $0x48] sm:$0xff] }
 0x1a2   :  { %v484_v0 = vmul.f32 0.01, %v466_v51  ;;  %vm476_vm8 = vcmp.ge.f32.partialorder %v466_v51, 0.0  ;;  %v634_v43 = vmul.f32 0.01, %v618_v24  ;;  %vm626_vm0 = vcmp.ge.f32.partialorder %v618_v24, 0.0 }
 0x1a3   :  { %v486_v53 = vsel %vm470_vm4, %v451_v13, %v478_v45 }
 0x1a4   :  { %v492_v41 = vsel %vm476_vm8, %v466_v51, %v484_v0  ;;  %v642_v29 = vsel %vm626_vm0, %v618_v24, %v634_v43  ;;  %v648_v59 = vadd.f32 %v640_v55, %v486_v53  ;;  %v2696_v0 = vld [vmem:[%s3919_s3 + $0x10] sm:$0xff]  ;;  %v2705_v53 = vld [vmem:[%s3919_s3 + $0x58] sm:$0xff] }
 0x1a5   :  { %v654_v31 = vadd.f32 %v646_v35, %v492_v41  ;;  %v650_v51 = vadd.f32 %v642_v29, %v488_v46  ;;  %v2697_v35 = vld [vmem:[%s3919_s3 + $0x18] sm:$0xff] }
 0x1a7   :  { %v467_v14 = vpop.f32.mrf.mxu0  ;;  %v673_v4 = vpack.c.bf16 %v651_v60, %v650_v51  ;;  %v2704_v51 = vld [vmem:[%s3919_s3 + $0x50] sm:$0xff] }
 0x1a8   :  { %v468_v63 = vadd.f32 %v467_v14, %v3239_v44  ;;  %v491_v44 = vsel %vm475_vm9, %v463_v28, %v483_v18  ;;  %v672_v28 = vpack.c.bf16 %v649_v56, %v648_v59  ;;  %v2883_v18 = vmov 1  }
 0x1a9   :  { %v653_v26 = vadd.f32 %v645_v12, %v491_v44  ;;  %2806 = vset.pattern.permute.xlu1 %v2883_v18  ;;  %2807 = vset.pattern.permute.xlu2 %v2883_v18 }
 0x1aa   :  { %vm477_vm11 = vcmp.ge.f32.partialorder %v468_v63, 0.0  ;;  %v485_v2 = vmul.f32 0.01, %v468_v63  ;;  %944 = vperm.xlu1 %2806, %v3324_v54   ;;  %2805 = vset.pattern.permute.xlu0 %v2883_v18 }
 0x1ab   :  { %v674_v48 = vpack.c.bf16 %v653_v26, %v652_v16  ;;  %932 = vperm.xlu2 %2807, %v3280_v36   ;;  %940 = vperm.xlu0 %2805, %v3285_v6  }
 0x1ac   :  { %v493_v15 = vsel %vm477_vm11, %v468_v63, %v485_v2 }
 0x1ad   :  { %v655_v40 = vadd.f32 %v647_v9, %v493_v15 }
 0x1af   :  { %v675_v37 = vpack.c.bf16 %v655_v40, %v654_v31  ;;  %v700_v40 = vpop.permute.xlu2 %699 }
 0x1b1   :  { %833 = vmatpush.bf16.msra.mxu1 %v675_v37 }
 0x1b2   :  { %936 = vperm.xlu1 %2806, %v3001_v57  }
 0x1b3   :  { %924 = vperm.xlu2 %2807, %v3112_v58   ;;  %928 = vperm.xlu0 %2805, %v3300_v61  }
 0x1b5   :  { %834 = vmatpush.bf16.msra.mxu1 %v674_v48 }
 0x1b9   :  { %835 = vmatpush.bf16.msra.mxu1 %v673_v4 }
 0x1ba   :  { %916 = vperm.xlu1 %2806, %v3261_v52  }
 0x1bb   :  { %920 = vperm.xlu2 %2807, %v3305_v62  }
 0x1bd   :  { %836 = vmatpush.bf16.msra.mxu1 %v672_v28  ;;  %v3353_v28 = vld [vmem:[%s3917_s1 + $0x78] sm:$0xff] }
 0x1c0   :  { %2346 = vmatmul.msk.bf16.vlgmr.msra.gmra.mxu1 %vm804_vm5, %v2694_v22  ;;  %v3358_v22 = vld [vmem:[%s3917_s1 + $0x70] sm:$0xff] }
 0x1d0   :  { %2347 = vmatmul.msk.bf16.gmra.mxu1 %vm804_vm5, %v2695_v23  ;;  %v2884_v23 = vmov 2  }
 0x1d1   :  { %2809 = vset.pattern.permute.xlu1 %v2884_v23  ;;  %2808 = vset.pattern.permute.xlu0 %v2884_v23 }
 0x1d2   :  { %1158 = vperm.xlu1 %2809, %v3353_v28   ;;  %1154 = vperm.xlu0 %2808, %v3358_v22  }
 0x1d3   :  { %2810 = vset.pattern.permute.xlu2 %v2884_v23 }
 0x1d4   :  { %1122 = vperm.xlu2 %2810, %v3285_v6  }
 0x1da   :  { %1126 = vperm.xlu1 %2809, %v3324_v54  }
 0x1e0   :  { %2348 = vmatmul.msk.bf16.gmra.mxu1 %vm804_vm5, %v2696_v0 }
 0x1e2   :  { %1114 = vperm.xlu1 %2809, %v3280_v36  }
 0x1f0   :  { %2349 = vmatmul.msk.bf16.gmra.mxu1 %vm804_vm5, %v2697_v35  ;;  %v3366_v35 = vld [vmem:[%s3917_s1 + $0x68] sm:$0xff] }
 0x1f1   :  { %1150 = vperm.xlu0 %2808, %v3366_v35  }
 0x203   :  { %v725_v63 = vpop.permute.xlu0 %724 }
 0x20b   :  { %v710_v43 = vpop.permute.xlu0 %709 }
 0x23d   :  { %v838_v9 = vpop.f32.mrf.mxu1 }
 0x23e   :  { %v839_v42 = vadd.f32 %v838_v9, %v695_v49  ;;  %v3405_v49 = vld [vmem:[%s3917_s1 + $0x28] sm:$0xff] }
 0x240   :  { %v878_v45 = vmul.f32 0.01, %v839_v42  ;;  %vm870_vm13 = vcmp.ge.f32.partialorder %v839_v42, 0.0 }
 0x242   :  { %v886_v60 = vsel %vm870_vm13, %v839_v42, %v878_v45  ;;  %v2714_v42 = vld [vmem:[%s3919_s3 + $0xa0] sm:$0xff] }
 0x245   :  { %v840_v24 = vpop.f32.mrf.mxu1 }
 0x246   :  { %v841_v33 = vadd.f32 %v840_v24, %v700_v40  ;;  %v933_v24 = vpop.permute.xlu2 %932 }
 0x248   :  { %v879_v16 = vmul.f32 0.01, %v841_v33  ;;  %vm871_vm12 = vcmp.ge.f32.partialorder %v841_v33, 0.0 }
 0x24a   :  { %v887_v48 = vsel %vm871_vm12, %v841_v33, %v879_v16  ;;  %v3415_v33 = vld [vmem:[%s3917_s1 + $0x10] sm:$0xff]  ;;  %v2717_v16 = vld [vmem:[%s3919_s3 + $0xb8] sm:$0xff] }
 0x24b   :  { %v911_v29 = vpack.c.bf16 %v887_v48, %v886_v60 }
 0x24d   :  { %v843_v1 = vpop.f32.mrf.mxu1 }
 0x24e   :  { %v844_v12 = vadd.f32 %v843_v1, %v705_v11  ;;  %v3374_v1 = vld [vmem:[%s3917_s1 + $0x50] sm:$0xff] }
 0x24f   :  { %1138 = vperm.xlu0 %2808, %v3374_v1  }
 0x250   :  { %v880_v38 = vmul.f32 0.01, %v844_v12  ;;  %vm872_vm11 = vcmp.ge.f32.partialorder %v844_v12, 0.0 }
 0x252   :  { %v888_v46 = vsel %vm872_vm11, %v844_v12, %v880_v38  ;;  %v2715_v38 = vld [vmem:[%s3919_s3 + $0xa8] sm:$0xff] }
 0x255   :  { %v845_v10 = vpop.f32.mrf.mxu1 }
 0x256   :  { %v846_v15 = vadd.f32 %v845_v10, %v710_v43  ;;  %v945_v10 = vpop.permute.xlu1 %944  ;;  %v3387_v43 = vld [vmem:[%s3917_s1 + $0x40] sm:$0xff] }
 0x257   :  { %1110 = vperm.xlu0 %2808, %v3300_v61  }
 0x258   :  { %v881_v37 = vmul.f32 0.01, %v846_v15  ;;  %vm873_vm10 = vcmp.ge.f32.partialorder %v846_v15, 0.0 }
 0x25a   :  { %v889_v34 = vsel %vm873_vm10, %v846_v15, %v881_v37  ;;  %v2712_v37 = vld [vmem:[%s3919_s3 + $0x90] sm:$0xff] }
 0x25b   :  { %v912_v47 = vpack.c.bf16 %v889_v34, %v888_v46 }
 0x25d   :  { %v848_v14 = vpop.f32.mrf.mxu1 }
 0x25e   :  { %v849_v27 = vadd.f32 %v848_v14, %v715_v5  ;;  %v3380_v5 = vld [vmem:[%s3917_s1 + $0x58] sm:$0xff]  ;;  %v937_v18 = vpop.permute.xlu1 %936 }
 0x25f   :  { %1142 = vperm.xlu1 %2809, %v3380_v5   ;;  %1098 = vperm.xlu0 %2808, %v3261_v52  }
 0x260   :  { %v882_v13 = vmul.f32 0.01, %v849_v27  ;;  %vm874_vm9 = vcmp.ge.f32.partialorder %v849_v27, 0.0 }
 0x262   :  { %v890_v30 = vsel %vm874_vm9, %v849_v27, %v882_v13 }
 0x265   :  { %v850_v8 = vpop.f32.mrf.mxu1 }
 0x266   :  { %v851_v41 = vadd.f32 %v850_v8, %v720_v20  ;;  %v941_v8 = vpop.permute.xlu0 %940 }
 0x267   :  { %1130 = vperm.xlu1 %2809, %v3387_v43  }
 0x268   :  { %v883_v44 = vmul.f32 0.01, %v851_v41  ;;  %vm875_vm8 = vcmp.ge.f32.partialorder %v851_v41, 0.0 }
 0x26a   :  { %v891_v26 = vsel %vm875_vm8, %v851_v41, %v883_v44  ;;  %v917_v44 = vpop.permute.xlu1 %916 }
 0x26b   :  { %v913_v3 = vpack.c.bf16 %v891_v26, %v890_v30  ;;  %v2713_v26 = vld [vmem:[%s3919_s3 + $0x98] sm:$0xff]  ;;  %v3437_v30 = vld [vmem:[%s3917_s1 + $0x48] sm:$0xff] }
 0x26d   :  { %v853_v19 = vpop.f32.mrf.mxu1 }
 0x26e   :  { %v854_v2 = vadd.f32 %v853_v19, %v725_v63  ;;  %v929_v41 = vpop.permute.xlu0 %928 }
 0x26f   :  { %1102 = vperm.xlu1 %2809, %v3305_v62  }
 0x270   :  { %v884_v17 = vmul.f32 0.01, %v854_v2  ;;  %vm876_vm6 = vcmp.ge.f32.partialorder %v854_v2, 0.0 }
 0x272   :  { %v892_v57 = vsel %vm876_vm6, %v854_v2, %v884_v17 }
 0x275   :  { %v855_v21 = vpop.f32.mrf.mxu1 }
 0x276   :  { %v856_v7 = vadd.f32 %v855_v21, %v730_v25  ;;  %v925_v25 = vpop.permute.xlu2 %924  ;;  %v1155_v60 = vpop.permute.xlu0 %1154 }
 0x278   :  { %vm877_vm7 = vcmp.ge.f32.partialorder %v856_v7, 0.0  ;;  %v885_v31 = vmul.f32 0.01, %v856_v7 }
 0x27a   :  { %v893_v32 = vsel %vm877_vm7, %v856_v7, %v885_v31 }
 0x27b   :  { %v914_v58 = vpack.c.bf16 %v893_v32, %v892_v57  ;;  %v2710_v57 = vld [vmem:[%s3919_s3 + $0x80] sm:$0xff] }
 0x27c   :  { %v3399_v32 = vld [vmem:[%s3917_s1 + $0x60] sm:$0xff] }
 0x27d   :  { %1039 = vmatpush.bf16.msra.mxu2 %v914_v58  ;;  %1146 = vperm.xlu2 %2810, %v3399_v32   ;;  %v2711_v58 = vld [vmem:[%s3919_s3 + $0x88] sm:$0xff] }
 0x27e   :  { %v921_v7 = vpop.permute.xlu2 %920 }
 0x281   :  { %1040 = vmatpush.bf16.msra.mxu2 %v913_v3  ;;  %v2716_v3 = vld [vmem:[%s3919_s3 + $0xb0] sm:$0xff] }
 0x285   :  { %1041 = vmatpush.bf16.msra.mxu2 %v912_v47  ;;  %1118 = vperm.xlu2 %2810, %v3405_v49   ;;  %v1159_v47 = vpop.permute.xlu1 %1158 }
 0x289   :  { %1042 = vmatpush.bf16.msra.mxu2 %v911_v29 }
 0x28c   :  { %2402 = vmatmul.msk.bf16.vlgmr.msra.gmra.mxu2 %vm804_vm5, %v2702_v50 }
 0x28d   :  { %1106 = vperm.xlu2 %2810, %v3415_v33   ;;  %v1127_v50 = vpop.permute.xlu1 %1126 }
 0x295   :  { %1134 = vperm.xlu2 %2810, %v3437_v30  }
 0x29c   :  { %2403 = vmatmul.msk.bf16.gmra.mxu2 %vm804_vm5, %v2703_v39  ;;  %v1151_v39 = vpop.permute.xlu0 %1150 }
 0x2ac   :  { %2404 = vmatmul.msk.bf16.gmra.mxu2 %vm804_vm5, %v2704_v51 }
 0x2bc   :  { %2405 = vmatmul.msk.bf16.gmra.mxu2 %vm804_vm5, %v2705_v53  ;;  %v3458_v53 = vpop.permute.xlu1 %1114 }
 0x30f   :  { %v1044_v55 = vpop.f32.mrf.mxu2 }
 0x310   :  { %v1045_v12 = vadd.f32 %v1044_v55, %v917_v44  ;;  %v1139_v55 = vpop.permute.xlu0 %1138 }
 0x317   :  { %v1046_v4 = vpop.f32.mrf.mxu2 }
 0x318   :  { %v1047_v31 = vadd.f32 %v1046_v4, %v921_v7 }
 0x31a   :  { %v1093_v13 = vpack.c.bf16 %v1047_v31, %v1045_v12 }
 0x31f   :  { %v1049_v56 = vpop.f32.mrf.mxu2 }
 0x320   :  { %v1050_v15 = vadd.f32 %v1049_v56, %v925_v25  ;;  %v1143_v56 = vpop.permute.xlu1 %1142 }
 0x327   :  { %v1051_v59 = vpop.f32.mrf.mxu2 }
 0x328   :  { %v1052_v27 = vadd.f32 %v1051_v59, %v929_v41  ;;  %v3460_v59 = vpop.permute.xlu0 %1110 }
 0x32a   :  { %v1094_v40 = vpack.c.bf16 %v1052_v27, %v1050_v15 }
 0x32f   :  { %v1054_v0 = vpop.f32.mrf.mxu2 }
 0x330   :  { %v1055_v21 = vadd.f32 %v1054_v0, %v933_v24  ;;  %v1131_v0 = vpop.permute.xlu1 %1130  ;;  %v1099_v24 = vpop.permute.xlu0 %1098 }
 0x337   :  { %v1056_v9 = vpop.f32.mrf.mxu2 }
 0x338   :  { %v1057_v20 = vadd.f32 %v1056_v9, %v937_v18 }
 0x33a   :  { %v1095_v17 = vpack.c.bf16 %v1057_v20, %v1055_v21  ;;  %v2885_v21 = vmov 3  }
 0x33b   :  { %2812 = vset.pattern.permute.xlu0 %v2885_v21  ;;  %2811 = vset.pattern.permute.xlu2 %v2885_v21 }
 0x33c   :  { %1388 = vperm.xlu0 %2812, %v3353_v28   ;;  %1384 = vperm.xlu2 %2811, %v3358_v22  }
 0x33d   :  { %2813 = vset.pattern.permute.xlu1 %v2885_v21 }
 0x33e   :  { %1352 = vperm.xlu1 %2813, %v3285_v6  }
 0x33f   :  { %v1059_v14 = vpop.f32.mrf.mxu2 }
 0x340   :  { %v1060_v19 = vadd.f32 %v1059_v14, %v941_v8 }
 0x344   :  { %1344 = vperm.xlu0 %2812, %v3280_v36   ;;  %1356 = vperm.xlu2 %2811, %v3324_v54  }
 0x346   :  { %1376 = vperm.xlu1 %2813, %v3399_v32  }
 0x347   :  { %v1061_v63 = vpop.f32.mrf.mxu2 }
 0x348   :  { %v1062_v11 = vadd.f32 %v1061_v63, %v945_v10 }
 0x34a   :  { %v1096_v2 = vpack.c.bf16 %v1062_v11, %v1060_v19  ;;  %v1123_v11 = vpop.permute.xlu2 %1122 }
 0x34c   :  { %1229 = vmatpush.bf16.msra.mxu3 %v1096_v2  ;;  %1372 = vperm.xlu0 %2812, %v3380_v5  }
 0x34d   :  { %1380 = vperm.xlu2 %2811, %v3366_v35  }
 0x34e   :  { %1348 = vperm.xlu1 %2813, %v3405_v49  }
 0x350   :  { %1230 = vmatpush.bf16.msra.mxu3 %v1095_v17 }
 0x352   :  { %v1147_v2 = vpop.permute.xlu2 %1146 }
 0x354   :  { %1231 = vmatpush.bf16.msra.mxu3 %v1094_v40  ;;  %1360 = vperm.xlu0 %2812, %v3387_v43  }
 0x355   :  { %1368 = vperm.xlu2 %2811, %v3374_v1  }
 0x356   :  { %1336 = vperm.xlu1 %2813, %v3415_v33  }
 0x358   :  { %1232 = vmatpush.bf16.msra.mxu3 %v1093_v13 }
 0x35a   :  { %v1119_v27 = vpop.permute.xlu2 %1118 }
 0x35b   :  { %2458 = vmatmul.msk.bf16.vlgmr.msra.gmra.mxu3 %vm804_vm5, %v2710_v57 }
 0x35c   :  { %1332 = vperm.xlu0 %2812, %v3305_v62  }
 0x35d   :  { %1340 = vperm.xlu2 %2811, %v3300_v61  }
 0x35e   :  { %1364 = vperm.xlu1 %2813, %v3437_v30  }
 0x362   :  { %v1107_v15 = vpop.permute.xlu2 %1106 }
 0x365   :  { %1328 = vperm.xlu2 %2811, %v3261_v52  }
 0x36b   :  { %2459 = vmatmul.msk.bf16.gmra.mxu3 %vm804_vm5, %v2711_v58 }
 0x37b   :  { %2460 = vmatmul.msk.bf16.gmra.mxu3 %vm804_vm5, %v2712_v37 }
 0x38b   :  { %2461 = vmatmul.msk.bf16.gmra.mxu3 %vm804_vm5, %v2713_v26  ;;  %v1135_v26 = vpop.permute.xlu2 %1134 }
 0x39b   :  { %2462 = vmatmul.msk.bf16.gmra.mxu3 %vm804_vm5, %v2714_v42 }
 0x3ab   :  { %2463 = vmatmul.msk.bf16.gmra.mxu3 %vm804_vm5, %v2715_v38 }
 0x3bb   :  { %2464 = vmatmul.msk.bf16.gmra.mxu3 %vm804_vm5, %v2716_v3 }
 0x3cb   :  { %2465 = vmatmul.msk.bf16.gmra.mxu3 %vm804_vm5, %v2717_v16 }
 0x3de   :  { %v1234_v34 = vpop.f32.mrf.mxu3 }
 0x3df   :  { %v1235_v8 = vadd.f32 %v1234_v34, %v1099_v24 }
 0x3e6   :  { %v3448_v45 = vpop.f32.mrf.mxu3 }
 0x3ee   :  { %v3450_v46 = vpop.f32.mrf.mxu3 }
 0x3f6   :  { %v3452_v48 = vpop.f32.mrf.mxu3 }
 0x3fe   :  { %v3454_v29 = vpop.f32.mrf.mxu3 }
 0x406   :  { %v3456_v51 = vpop.f32.mrf.mxu3 }
 0x40e   :  { %v1249_v4 = vpop.f32.mrf.mxu3 }
 0x40f   :  { %v1250_v34 = vadd.f32 %v1249_v4, %v1123_v11 }
 0x416   :  { %v1251_v23 = vpop.f32.mrf.mxu3 }
 0x41e   :  { %v1254_v9 = vpop.f32.mrf.mxu3 }
 0x41f   :  { %v1255_v10 = vadd.f32 %v1254_v9, %v1131_v0 }
 0x421   :  { %vm1274_vm14 = vcmp.ge.f32.partialorder %v1255_v10, 0.0  ;;  %v1282_v14 = vmul.f32 0.01, %v1255_v10 }
 0x423   :  { %v1290_v25 = vsel %vm1274_vm14, %v1255_v10, %v1282_v14 }
 0x424   :  { %v3462_v18 = vadd.f32 %v1290_v25, %v1235_v8 }
 0x426   :  { %v1256_v63 = vpop.f32.mrf.mxu3 }
 0x42e   :  { %v1259_v19 = vpop.f32.mrf.mxu3 }
 0x42f   :  { %v1260_v42 = vadd.f32 %v1259_v19, %v1139_v55  ;;  %v1103_v19 = vpop.permute.xlu1 %1102 }
 0x431   :  { %v1284_v10 = vmul.f32 0.01, %v1260_v42  ;;  %vm1276_vm4 = vcmp.ge.f32.partialorder %v1260_v42, 0.0 }
 0x433   :  { %v1292_v11 = vsel %vm1276_vm4, %v1260_v42, %v1284_v10  ;;  %v2699_v10 = vld [vmem:[%s3919_s3 + $0x28] sm:$0xff] }
 0x436   :  { %v1261_v20 = vpop.f32.mrf.mxu3 }
 0x437   :  { %v1262_v57 = vadd.f32 %v1261_v20, %v1143_v56  ;;  %v1240_v20 = vadd.f32 %v3450_v46, %v1107_v15  ;;  %v2718_v46 = vld [vmem:[%s3919_s3 + $0xc0] sm:$0xff]  ;;  %v2723_v15 = vld [vmem:[%s3919_s3 + $0xe8] sm:$0xff] }
 0x439   :  { %v1285_v0 = vmul.f32 0.01, %v1262_v57  ;;  %vm1277_vm3 = vcmp.ge.f32.partialorder %v1262_v57, 0.0  ;;  %v1300_v21 = vadd.f32 %v1292_v11, %v1240_v20 }
 0x43b   :  { %v1293_v25 = vsel %vm1277_vm3, %v1262_v57, %v1285_v0 }
 0x43e   :  { %v1264_v41 = vpop.f32.mrf.mxu3 }
 0x43f   :  { %v1265_v40 = vadd.f32 %v1264_v41, %v1147_v2 }
 0x441   :  { %v1286_v38 = vmul.f32 0.01, %v1265_v40  ;;  %vm1278_vm2 = vcmp.ge.f32.partialorder %v1265_v40, 0.0 }
 0x443   :  { %v1294_v14 = vsel %vm1278_vm2, %v1265_v40, %v1286_v38  ;;  %v3528_v38 = vpop.permute.xlu0 %1388 }
 0x446   :  { %v1266_v17 = vpop.f32.mrf.mxu3 }
 0x447   :  { %v1267_v31 = vadd.f32 %v1266_v17, %v1151_v39  ;;  %v1257_v39 = vadd.f32 %v1256_v63, %v1135_v26  ;;  %v1242_v63 = vadd.f32 %v3452_v48, %v3460_v59  ;;  %v2720_v17 = vld [vmem:[%s3919_s3 + $0xd0] sm:$0xff]  ;;  %v3524_v26 = vpop.permute.xlu1 %1352 }
 0x449   :  { %v1287_v58 = vmul.f32 0.01, %v1267_v31  ;;  %vm1279_vm0 = vcmp.ge.f32.partialorder %v1267_v31, 0.0  ;;  %v1283_v8 = vmul.f32 0.01, %v1257_v39  ;;  %vm1275_vm6 = vcmp.ge.f32.partialorder %v1257_v39, 0.0 }
 0x44a   :  { %v1301_v41 = vadd.f32 %v1293_v25, %v1242_v63 }
 0x44b   :  { %v1295_v56 = vsel %vm1279_vm0, %v1267_v31, %v1287_v58  ;;  %v2725_v31 = vld [vmem:[%s3919_s3 + $0xf8] sm:$0xff] }
 0x44c   :  { %v1324_v48 = vpack.c.bf16 %v1301_v41, %v1300_v21 }
 0x44e   :  { %v1269_v7 = vpop.f32.mrf.mxu3 }
 0x44f   :  { %v1270_v44 = vadd.f32 %v1269_v7, %v1155_v60  ;;  %v1252_v60 = vadd.f32 %v1251_v23, %v1127_v50  ;;  %v1245_v50 = vadd.f32 %v3454_v29, %v3458_v53  ;;  %v1291_v29 = vsel %vm1275_vm6, %v1257_v39, %v1283_v8  ;;  %v2722_v7 = vld [vmem:[%s3919_s3 + $0xe0] sm:$0xff] }
 0x450   :  { %v1237_v53 = vadd.f32 %v3448_v45, %v1103_v19  ;;  %v2719_v45 = vld [vmem:[%s3919_s3 + $0xc8] sm:$0xff]  ;;  %v2698_v39 = vld [vmem:[%s3919_s3 + $0x20] sm:$0xff] }
 0x451   :  { %v1288_v12 = vmul.f32 0.01, %v1270_v44  ;;  %vm1280_vm15 = vcmp.ge.f32.partialorder %v1270_v44, 0.0  ;;  %2350 = vmatmul.msk.bf16.gmra.mxu1 %vm804_vm5, %v2698_v39 }
 0x452   :  { %v1299_v59 = vadd.f32 %v1291_v29, %v1237_v53  ;;  %v2700_v53 = vld [vmem:[%s3919_s3 + $0x30] sm:$0xff] }
 0x453   :  { %v1296_v16 = vsel %vm1280_vm15, %v1270_v44, %v1288_v12  ;;  %v2724_v44 = vld [vmem:[%s3919_s3 + $0xf0] sm:$0xff] }
 0x454   :  { %v1304_v55 = vadd.f32 %v1296_v16, %v1250_v34  ;;  %v1377_v34 = vpop.permute.xlu1 %1376 }
 0x456   :  { %v1271_v13 = vpop.f32.mrf.mxu3 }
 0x457   :  { %v1272_v37 = vadd.f32 %v1271_v13, %v1159_v47  ;;  %v1247_v47 = vadd.f32 %v3456_v51, %v1119_v27  ;;  %v1302_v51 = vadd.f32 %v1294_v14, %v1245_v50  ;;  %v1323_v27 = vpack.c.bf16 %v1299_v59, %v3462_v18  ;;  %v2721_v18 = vld [vmem:[%s3919_s3 + $0xd8] sm:$0xff]  ;;  %v3520_v13 = vpop.permute.xlu2 %1384 }
 0x459   :  { %vm1281_vm1 = vcmp.ge.f32.partialorder %v1272_v37, 0.0  ;;  %v1289_v3 = vmul.f32 0.01, %v1272_v37  ;;  %v1303_v23 = vadd.f32 %v1295_v56, %v1247_v47 }
 0x45b   :  { %v1297_v9 = vsel %vm1281_vm1, %v1272_v37, %v1289_v3  ;;  %v1325_v2 = vpack.c.bf16 %v1303_v23, %v1302_v51 }
 0x45c   :  { %v1305_v24 = vadd.f32 %v1297_v9, %v1252_v60  ;;  %v3534_v60 = vpop.permute.xlu0 %1344  ;;  %v3542_v56 = vpop.permute.xlu1 %1348 }
 0x45e   :  { %v1326_v4 = vpack.c.bf16 %v1305_v24, %v1304_v55 }
 0x45f   :  { %v3522_v37 = vpop.permute.xlu2 %1356 }
 0x460   :  { %1459 = vmatpush.bf16.msrb.mxu0 %v1326_v4 }
 0x461   :  { %2351 = vmatmul.msk.bf16.gmra.mxu1 %vm804_vm5, %v2699_v10 }
 0x464   :  { %1460 = vmatpush.bf16.msrb.mxu0 %v1325_v2  ;;  %v1373_v47 = vpop.permute.xlu0 %1372  ;;  %v1337_v14 = vpop.permute.xlu1 %1336 }
 0x467   :  { %v3530_v3 = vpop.permute.xlu2 %1380 }
 0x468   :  { %1461 = vmatpush.bf16.msrb.mxu0 %v1324_v48 }
 0x46c   :  { %1462 = vmatpush.bf16.msrb.mxu0 %v1323_v27  ;;  %v1361_v50 = vpop.permute.xlu0 %1360  ;;  %v1365_v19 = vpop.permute.xlu1 %1364 }
 0x46f   :  { %2514 = vmatmul.msk.bf16.vlgmr.msrb.gmra.mxu0 %vm804_vm5, %v2718_v46  ;;  %v1369_v0 = vpop.permute.xlu2 %1368 }
 0x471   :  { %2352 = vmatmul.msk.bf16.gmra.mxu1 %vm804_vm5, %v2700_v53 }
 0x474   :  { %v1333_v2 = vpop.permute.xlu0 %1332 }
 0x477   :  { %v1341_v55 = vpop.permute.xlu2 %1340 }
 0x47f   :  { %2515 = vmatmul.msk.bf16.gmra.mxu0 %vm804_vm5, %v2719_v45  ;;  %v1329_v23 = vpop.permute.xlu2 %1328 }
 0x48f   :  { %2516 = vmatmul.msk.bf16.gmra.mxu0 %vm804_vm5, %v2720_v17  ;;  %v2886_v17 = vmov 4  }
 0x490   :  { %2814 = vset.pattern.permute.xlu1 %v2886_v17  ;;  %2815 = vset.pattern.permute.xlu2 %v2886_v17 }
 0x491   :  { %1614 = vperm.xlu1 %2814, %v3358_v22   ;;  %1618 = vperm.xlu2 %2815, %v3353_v28  }
 0x492   :  { %2816 = vset.pattern.permute.xlu0 %v2886_v17  ;;  %v2732_v17 = vld [vmem:[%s3919_s3 + $0x130] sm:$0xff] }
 0x493   :  { %1582 = vperm.xlu0 %2816, %v3285_v6  }
 0x499   :  { %1586 = vperm.xlu1 %2814, %v3324_v54   ;;  %1606 = vperm.xlu2 %2815, %v3399_v32  }
 0x49b   :  { %1578 = vperm.xlu0 %2816, %v3405_v49  }
 0x49f   :  { %2517 = vmatmul.msk.bf16.gmra.mxu0 %vm804_vm5, %v2721_v18 }
 0x4a1   :  { %1610 = vperm.xlu1 %2814, %v3366_v35   ;;  %1574 = vperm.xlu2 %2815, %v3280_v36  }
 0x4a3   :  { %1566 = vperm.xlu0 %2816, %v3415_v33  }
 0x4a9   :  { %1598 = vperm.xlu1 %2814, %v3374_v1   ;;  %1602 = vperm.xlu2 %2815, %v3380_v5  }
 0x4ab   :  { %1594 = vperm.xlu0 %2816, %v3437_v30  }
 0x4af   :  { %2518 = vmatmul.msk.bf16.gmra.mxu0 %vm804_vm5, %v2722_v7 }
 0x4b1   :  { %1570 = vperm.xlu1 %2814, %v3300_v61   ;;  %1590 = vperm.xlu2 %2815, %v3387_v43  }
 0x4b9   :  { %1558 = vperm.xlu1 %2814, %v3261_v52   ;;  %1562 = vperm.xlu2 %2815, %v3305_v62   ;;  %v2727_v52 = vld [vmem:[%s3919_s3 + $0x108] sm:$0xff] }
 0x4bf   :  { %2519 = vmatmul.msk.bf16.gmra.mxu0 %vm804_vm5, %v2723_v15 }
 0x4ce   :  { %v858_v62 = vpop.f32.mrf.mxu1 }
 0x4cf   :  { %2520 = vmatmul.msk.bf16.gmra.mxu0 %vm804_vm5, %v2724_v44 }
 0x4df   :  { %2521 = vmatmul.msk.bf16.gmra.mxu0 %vm804_vm5, %v2725_v31  ;;  %v2701_v31 = vld [vmem:[%s3919_s3 + $0x38] sm:$0xff] }
 0x4e0   :  { %2353 = vmatmul.msk.bf16.gmra.mxu1 %vm804_vm5, %v2701_v31 }
 0x4ec   :  { %v1464_v40 = vpop.f32.mrf.mxu0 }
 0x4ed   :  { %v1465_v63 = vadd.f32 %v1464_v40, %v1329_v23 }
 0x4f4   :  { %v1466_v12 = vpop.f32.mrf.mxu0 }
 0x4f5   :  { %v1467_v21 = vadd.f32 %v1466_v12, %v1333_v2 }
 0x4fc   :  { %v1469_v57 = vpop.f32.mrf.mxu0 }
 0x4fd   :  { %v1470_v12 = vadd.f32 %v1469_v57, %v1337_v14 }
 0x504   :  { %v1471_v58 = vpop.f32.mrf.mxu0 }
 0x505   :  { %v1472_v39 = vadd.f32 %v1471_v58, %v1341_v55 }
 0x50c   :  { %v3526_v42 = vpop.f32.mrf.mxu0 }
 0x514   :  { %v3532_v16 = vpop.f32.mrf.mxu0 }
 0x51c   :  { %v3540_v9 = vpop.f32.mrf.mxu0 }
 0x51d   :  { %v1480_v2 = vadd.f32 %v3540_v9, %v3524_v26  ;;  %v859_v26 = vpop.f32.mrf.mxu1 }
 0x524   :  { %v3544_v24 = vpop.f32.mrf.mxu0 }
 0x525   :  { %v861_v9 = vpop.f32.mrf.mxu1 }
 0x52c   :  { %v1484_v4 = vpop.f32.mrf.mxu0 }
 0x52d   :  { %v1485_v8 = vadd.f32 %v1484_v4, %v1361_v50 }
 0x52f   :  { %vm1504_vm7 = vcmp.ge.f32.partialorder %v1485_v8, 0.0  ;;  %v1512_v25 = vmul.f32 0.01, %v1485_v8 }
 0x531   :  { %v1520_v51 = vsel %vm1504_vm7, %v1485_v8, %v1512_v25  ;;  %v1475_v8 = vadd.f32 %v3526_v42, %v3534_v60 }
 0x532   :  { %v3550_v11 = vadd.f32 %v1520_v51, %v1465_v63 }
 0x534   :  { %v1486_v20 = vpop.f32.mrf.mxu0 }
 0x535   :  { %v1487_v41 = vadd.f32 %v1486_v20, %v1365_v19 }
 0x537   :  { %vm1505_vm8 = vcmp.ge.f32.partialorder %v1487_v41, 0.0  ;;  %v1513_v29 = vmul.f32 0.01, %v1487_v41 }
 0x539   :  { %v1521_v48 = vsel %vm1505_vm8, %v1487_v41, %v1513_v29  ;;  %v1482_v41 = vadd.f32 %v3544_v24, %v3522_v37  ;;  %v2728_v37 = vld [vmem:[%s3919_s3 + $0x110] sm:$0xff]  ;;  %v2729_v24 = vld [vmem:[%s3919_s3 + $0x118] sm:$0xff] }
 0x53a   :  { %v3556_v59 = vadd.f32 %v1521_v48, %v1467_v21  ;;  %v2730_v48 = vld [vmem:[%s3919_s3 + $0x120] sm:$0xff] }
 0x53c   :  { %v1489_v27 = vpop.f32.mrf.mxu0  ;;  %v1553_v46 = vpack.c.bf16 %v3556_v59, %v3550_v11  ;;  %v862_v11 = vpop.f32.mrf.mxu1 }
 0x53d   :  { %v1490_v45 = vadd.f32 %v1489_v27, %v1369_v0 }
 0x53f   :  { %v1514_v18 = vmul.f32 0.01, %v1490_v45  ;;  %vm1506_vm9 = vcmp.ge.f32.partialorder %v1490_v45, 0.0 }
 0x541   :  { %v1522_v40 = vsel %vm1506_vm9, %v1490_v45, %v1514_v18  ;;  %v2733_v18 = vld [vmem:[%s3919_s3 + $0x138] sm:$0xff] }
 0x542   :  { %v1530_v10 = vadd.f32 %v1522_v40, %v1470_v12  ;;  %v3628_v40 = vpop.permute.xlu2 %1618 }
 0x544   :  { %v1491_v7 = vpop.f32.mrf.mxu0  ;;  %v864_v21 = vpop.f32.mrf.mxu1 }
 0x545   :  { %v1492_v15 = vadd.f32 %v1491_v7, %v1373_v47 }
 0x547   :  { %vm1507_vm10 = vcmp.ge.f32.partialorder %v1492_v15, 0.0  ;;  %v1515_v44 = vmul.f32 0.01, %v1492_v15 }
 0x549   :  { %v1523_v0 = vsel %vm1507_vm10, %v1492_v15, %v1515_v44  ;;  %v3626_v44 = vpop.permute.xlu1 %1614 }
 0x54a   :  { %v1531_v50 = vadd.f32 %v1523_v0, %v1472_v39 }
 0x54c   :  { %v1494_v6 = vpop.f32.mrf.mxu0  ;;  %v1554_v47 = vpack.c.bf16 %v1531_v50, %v1530_v10  ;;  %v865_v59 = vpop.f32.mrf.mxu1 }
 0x54d   :  { %v1495_v4 = vadd.f32 %v1494_v6, %v1377_v34  ;;  %v1477_v34 = vadd.f32 %v3532_v16, %v3542_v56  ;;  %v3634_v10 = vpop.permute.xlu2 %1606 }
 0x54f   :  { %v1516_v57 = vmul.f32 0.01, %v1495_v4  ;;  %vm1508_vm11 = vcmp.ge.f32.partialorder %v1495_v4, 0.0 }
 0x551   :  { %v1524_v23 = vsel %vm1508_vm11, %v1495_v4, %v1516_v57  ;;  %v3630_v39 = vpop.permute.xlu1 %1586  ;;  %v2706_v57 = vld [vmem:[%s3919_s3 + $0x60] sm:$0xff] }
 0x552   :  { %v1532_v36 = vadd.f32 %v1524_v23, %v1475_v8  ;;  %2406 = vmatmul.msk.bf16.gmra.mxu2 %vm804_vm5, %v2706_v57 }
 0x554   :  { %v1496_v58 = vpop.f32.mrf.mxu0 }
 0x555   :  { %v1497_v55 = vadd.f32 %v1496_v58, %v3530_v3  ;;  %v3642_v4 = vpop.permute.xlu2 %1574 }
 0x557   :  { %vm1509_vm12 = vcmp.ge.f32.partialorder %v1497_v55, 0.0  ;;  %v1517_v14 = vmul.f32 0.01, %v1497_v55 }
 0x559   :  { %v1525_v25 = vsel %vm1509_vm12, %v1497_v55, %v1517_v14  ;;  %v3636_v50 = vpop.permute.xlu1 %1610 }
 0x55a   :  { %v1533_v63 = vadd.f32 %v1525_v25, %v1477_v34  ;;  %v2707_v25 = vld [vmem:[%s3919_s3 + $0x68] sm:$0xff] }
 0x55c   :  { %v1499_v51 = vpop.f32.mrf.mxu0  ;;  %v1555_v3 = vpack.c.bf16 %v1533_v63, %v1532_v36 }
 0x55d   :  { %v1500_v19 = vadd.f32 %v1499_v51, %v3520_v13  ;;  %v867_v27 = vpop.f32.mrf.mxu1  ;;  %v1603_v23 = vpop.permute.xlu2 %1602 }
 0x55f   :  { %v1518_v42 = vmul.f32 0.01, %v1500_v19  ;;  %vm1510_vm13 = vcmp.ge.f32.partialorder %v1500_v19, 0.0 }
 0x561   :  { %v1526_v20 = vsel %vm1510_vm13, %v1500_v19, %v1518_v42  ;;  %v1599_v58 = vpop.permute.xlu1 %1598 }
 0x562   :  { %v1534_v61 = vadd.f32 %v1526_v20, %v1480_v2  ;;  %2407 = vmatmul.msk.bf16.gmra.mxu2 %vm804_vm5, %v2707_v25 }
 0x564   :  { %v1501_v16 = vpop.f32.mrf.mxu0 }
 0x565   :  { %v1502_v60 = vadd.f32 %v1501_v16, %v3528_v38  ;;  %v2726_v38 = vld [vmem:[%s3919_s3 + $0x100] sm:$0xff]  ;;  %v868_v45 = vpop.f32.mrf.mxu1  ;;  %v1591_v63 = vpop.permute.xlu2 %1590 }
 0x566   :  { %v2887_v45 = vmov 5  }
 0x567   :  { %vm1511_vm14 = vcmp.ge.f32.partialorder %v1502_v60, 0.0  ;;  %v1519_v56 = vmul.f32 0.01, %v1502_v60  ;;  %2818 = vset.pattern.permute.xlu1 %v2887_v45  ;;  %2817 = vset.pattern.permute.xlu0 %v2887_v45 }
 0x568   :  { %1848 = vperm.xlu1 %2818, %v3353_v28   ;;  %1844 = vperm.xlu0 %2817, %v3358_v22  }
 0x569   :  { %v1527_v29 = vsel %vm1511_vm14, %v1502_v60, %v1519_v56  ;;  %v1571_v8 = vpop.permute.xlu1 %1570  ;;  %2819 = vset.pattern.permute.xlu2 %v2887_v45 }
 0x56a   :  { %v1535_v13 = vadd.f32 %v1527_v29, %v1482_v41 }
 0x56c   :  { %v1556_v53 = vpack.c.bf16 %v1535_v13, %v1534_v61  ;;  %v2708_v13 = vld [vmem:[%s3919_s3 + $0x70] sm:$0xff] }
 0x56d   :  { %v1563_v41 = vpop.permute.xlu2 %1562 }
 0x56e   :  { %1689 = vmatpush.bf16.msrb.mxu1 %v1556_v53 }
 0x570   :  { %1816 = vperm.xlu1 %2818, %v3324_v54   ;;  %1840 = vperm.xlu0 %2817, %v3366_v35   ;;  %v3692_v54 = vld [vmem:[%s3917_s1 + $0x20] sm:$0xff] }
 0x572   :  { %1690 = vmatpush.bf16.msrb.mxu1 %v1555_v3  ;;  %v1559_v3 = vpop.permute.xlu1 %1558  ;;  %2408 = vmatmul.msk.bf16.gmra.mxu2 %vm804_vm5, %v2708_v13  ;;  %v2739_v13 = vld [vmem:[%s3919_s3 + $0x168] sm:$0xff] }
 0x576   :  { %1691 = vmatpush.bf16.msrb.mxu1 %v1554_v47  ;;  %v3640_v47 = vpop.permute.xlu0 %1582 }
 0x578   :  { %1804 = vperm.xlu1 %2818, %v3692_v54   ;;  %1828 = vperm.xlu0 %2817, %v3374_v1  }
 0x57a   :  { %1692 = vmatpush.bf16.msrb.mxu1 %v1553_v46  ;;  %v2731_v46 = vld [vmem:[%s3919_s3 + $0x128] sm:$0xff] }
 0x57d   :  { %2570 = vmatmul.msk.bf16.vlgmr.msrb.gmra.mxu1 %vm804_vm5, %v2726_v38 }
 0x57e   :  { %v3650_v14 = vpop.permute.xlu0 %1578 }
 0x580   :  { %1832 = vperm.xlu1 %2818, %v3380_v5  }
 0x586   :  { %v1567_v36 = vpop.permute.xlu0 %1566 }
 0x588   :  { %1820 = vperm.xlu1 %2818, %v3387_v43   ;;  %v2734_v43 = vld [vmem:[%s3919_s3 + $0x140] sm:$0xff] }
 0x58d   :  { %2571 = vmatmul.msk.bf16.gmra.mxu1 %vm804_vm5, %v2727_v52 }
 0x58e   :  { %v1595_v56 = vpop.permute.xlu0 %1594 }
 0x59d   :  { %2572 = vmatmul.msk.bf16.gmra.mxu1 %vm804_vm5, %v2728_v37 }
 0x5ad   :  { %2573 = vmatmul.msk.bf16.gmra.mxu1 %vm804_vm5, %v2729_v24 }
 0x5bd   :  { %2574 = vmatmul.msk.bf16.gmra.mxu1 %vm804_vm5, %v2730_v48  ;;  %v2709_v48 = vld [vmem:[%s3919_s3 + $0x78] sm:$0xff] }
 0x5be   :  { %2409 = vmatmul.msk.bf16.gmra.mxu2 %vm804_vm5, %v2709_v48 }
 0x5cd   :  { %2575 = vmatmul.msk.bf16.gmra.mxu1 %vm804_vm5, %v2731_v46 }
 0x5dd   :  { %2576 = vmatmul.msk.bf16.gmra.mxu1 %vm804_vm5, %v2732_v17 }
 0x5ed   :  { %2577 = vmatmul.msk.bf16.gmra.mxu1 %vm804_vm5, %v2733_v18 }
 0x5fa   :  { %v1694_v7 = vpop.f32.mrf.mxu1 }
 0x5fb   :  { %v1695_v16 = vadd.f32 %v1694_v7, %v1559_v3 }
 0x602   :  { %v1696_v15 = vpop.f32.mrf.mxu1 }
 0x603   :  { %v1697_v53 = vadd.f32 %v1696_v15, %v1563_v41  ;;  %v3677_v15 = vld [vmem:[%s3917_s1 + $0x30] sm:$0xff]  ;;  %v2738_v41 = vld [vmem:[%s3919_s3 + $0x160] sm:$0xff] }
 0x604   :  { %1812 = vperm.xlu2 %2819, %v3677_v15  }
 0x60a   :  { %v1699_v31 = vpop.f32.mrf.mxu1 }
 0x60b   :  { %v1700_v27 = vadd.f32 %v1699_v31, %v1567_v36 }
 0x60c   :  { %1836 = vperm.xlu2 %2819, %v3399_v32  }
 0x612   :  { %v1701_v12 = vpop.f32.mrf.mxu1 }
 0x613   :  { %v1702_v46 = vadd.f32 %v1701_v12, %v1571_v8 }
 0x614   :  { %1808 = vperm.xlu2 %2819, %v3405_v49  }
 0x61a   :  { %v3632_v0 = vpop.f32.mrf.mxu1 }
 0x61b   :  { %v1705_v25 = vadd.f32 %v3632_v0, %v3642_v4 }
 0x61c   :  { %1796 = vperm.xlu2 %2819, %v3415_v33   ;;  %v3715_v33 = vld [vmem:[%s3917_s1] sm:$0xff] }
 0x622   :  { %v3638_v6 = vpop.f32.mrf.mxu1 }
 0x624   :  { %1824 = vperm.xlu2 %2819, %v3437_v30  }
 0x62a   :  { %v3648_v55 = vpop.f32.mrf.mxu1 }
 0x62b   :  { %v1710_v5 = vadd.f32 %v3648_v55, %v3640_v47  ;;  %v2735_v47 = vld [vmem:[%s3919_s3 + $0x148] sm:$0xff]  ;;  %v2736_v55 = vld [vmem:[%s3919_s3 + $0x150] sm:$0xff] }
 0x632   :  { %v3652_v34 = vpop.f32.mrf.mxu1 }
 0x63a   :  { %v1714_v51 = vpop.f32.mrf.mxu1 }
 0x63b   :  { %v1715_v19 = vadd.f32 %v1714_v51, %v1591_v63 }
 0x63d   :  { %vm1734_vm15 = vcmp.ge.f32.partialorder %v1715_v19, 0.0  ;;  %v1742_v42 = vmul.f32 0.01, %v1715_v19 }
 0x63f   :  { %v1750_v60 = vsel %vm1734_vm15, %v1715_v19, %v1742_v42 }
 0x640   :  { %v3658_v20 = vadd.f32 %v1750_v60, %v1695_v16 }
 0x642   :  { %v1716_v2 = vpop.f32.mrf.mxu1 }
 0x643   :  { %v1717_v29 = vadd.f32 %v1716_v2, %v1595_v56  ;;  %v2737_v56 = vld [vmem:[%s3919_s3 + $0x158] sm:$0xff] }
 0x645   :  { %vm1735_vm0 = vcmp.ge.f32.partialorder %v1717_v29, 0.0  ;;  %v1743_v61 = vmul.f32 0.01, %v1717_v29 }
 0x647   :  { %v1751_v38 = vsel %vm1735_vm0, %v1717_v29, %v1743_v61 }
 0x648   :  { %v3664_v52 = vadd.f32 %v1751_v38, %v1697_v53 }
 0x64a   :  { %v1719_v62 = vpop.f32.mrf.mxu1  ;;  %v1783_v37 = vpack.c.bf16 %v3664_v52, %v3658_v20  ;;  %v2740_v52 = vld [vmem:[%s3919_s3 + $0x170] sm:$0xff] }
 0x64b   :  { %v1720_v26 = vadd.f32 %v1719_v62, %v1599_v58  ;;  %v2741_v62 = vld [vmem:[%s3919_s3 + $0x178] sm:$0xff] }
 0x64d   :  { %v1744_v9 = vmul.f32 0.01, %v1720_v26  ;;  %vm1736_vm1 = vcmp.ge.f32.partialorder %v1720_v26, 0.0 }
 0x64f   :  { %v1752_v59 = vsel %vm1736_vm1, %v1720_v26, %v1744_v9 }
 0x650   :  { %v1760_v18 = vadd.f32 %v1752_v59, %v1700_v27 }
 0x652   :  { %v1721_v24 = vpop.f32.mrf.mxu1 }
 0x653   :  { %v1722_v11 = vadd.f32 %v1721_v24, %v1603_v23  ;;  %v3760_v24 = vpop.permute.xlu1 %1848 }
 0x655   :  { %vm1737_vm2 = vcmp.ge.f32.partialorder %v1722_v11, 0.0  ;;  %v1745_v21 = vmul.f32 0.01, %v1722_v11 }
 0x657   :  { %v1753_v17 = vsel %vm1737_vm2, %v1722_v11, %v1745_v21  ;;  %v3762_v21 = vpop.permute.xlu0 %1844 }
 0x658   :  { %v1761_v7 = vadd.f32 %v1753_v17, %v1702_v46 }
 0x65a   :  { %v1724_v31 = vpop.f32.mrf.mxu1  ;;  %v1784_v12 = vpack.c.bf16 %v1761_v7, %v1760_v18 }
 0x65b   :  { %v1725_v57 = vadd.f32 %v1724_v31, %v3634_v10  ;;  %v1707_v10 = vadd.f32 %v3638_v6, %v3650_v14  ;;  %v3702_v6 = vld [vmem:[%s3917_s1 + $0x18] sm:$0xff]  ;;  %v3766_v27 = vpop.permute.xlu1 %1816 }
 0x65c   :  { %1800 = vperm.xlu0 %2817, %v3702_v6  }
 0x65d   :  { %v1746_v28 = vmul.f32 0.01, %v1725_v57  ;;  %vm1738_vm3 = vcmp.ge.f32.partialorder %v1725_v57, 0.0 }
 0x65e   :  { %v3764_v48 = vpop.permute.xlu2 %1812 }
 0x65f   :  { %v1754_v8 = vsel %vm1738_vm3, %v1725_v57, %v1746_v28  ;;  %v1841_v46 = vpop.permute.xlu0 %1840 }
 0x660   :  { %v1762_v35 = vadd.f32 %v1754_v8, %v1705_v25 }
 0x662   :  { %v1726_v22 = vpop.f32.mrf.mxu1 }
 0x663   :  { %v1727_v58 = vadd.f32 %v1726_v22, %v3636_v50  ;;  %v1805_v18 = vpop.permute.xlu1 %1804 }
 0x664   :  { %1788 = vperm.xlu0 %2817, %v3715_v33  }
 0x665   :  { %vm1739_vm4 = vcmp.ge.f32.partialorder %v1727_v58, 0.0  ;;  %v1747_v23 = vmul.f32 0.01, %v1727_v58 }
 0x666   :  { %v1837_v17 = vpop.permute.xlu2 %1836 }
 0x667   :  { %v1755_v36 = vsel %vm1739_vm4, %v1727_v58, %v1747_v23  ;;  %v1829_v7 = vpop.permute.xlu0 %1828 }
 0x668   :  { %v1763_v63 = vadd.f32 %v1755_v36, %v1707_v10 }
 0x66a   :  { %v1729_v50 = vpop.f32.mrf.mxu1  ;;  %v1785_v51 = vpack.c.bf16 %v1763_v63, %v1762_v35 }
 0x66b   :  { %v1730_v0 = vadd.f32 %v1729_v50, %v3626_v44  ;;  %v1712_v44 = vadd.f32 %v3652_v34, %v3630_v39  ;;  %v3722_v39 = vld [vmem:[%s3917_s1 + $0x8] sm:$0xff]  ;;  %v1064_v34 = vpop.f32.mrf.mxu2  ;;  %v1833_v57 = vpop.permute.xlu1 %1832 }
 0x66c   :  { %1792 = vperm.xlu1 %2818, %v3722_v39  }
 0x66d   :  { %v1748_v4 = vmul.f32 0.01, %v1730_v0  ;;  %vm1740_vm6 = vcmp.ge.f32.partialorder %v1730_v0, 0.0 }
 0x66f   :  { %v1756_v3 = vsel %vm1740_vm6, %v1730_v0, %v1748_v4 }
 0x670   :  { %v1764_v42 = vadd.f32 %v1756_v3, %v1710_v5 }
 0x672   :  { %v1731_v1 = vpop.f32.mrf.mxu1 }
 0x673   :  { %v1732_v49 = vadd.f32 %v1731_v1, %v3628_v40  ;;  %v1065_v60 = vpop.f32.mrf.mxu2  ;;  %v1821_v23 = vpop.permute.xlu1 %1820 }
 0x675   :  { %vm1741_vm7 = vcmp.ge.f32.partialorder %v1732_v49, 0.0  ;;  %v1749_v14 = vmul.f32 0.01, %v1732_v49 }
 0x677   :  { %v1757_v19 = vsel %vm1741_vm7, %v1732_v49, %v1749_v14 }
 0x678   :  { %v1765_v16 = vadd.f32 %v1757_v19, %v1712_v44 }
 0x67a   :  { %v1786_v40 = vpack.c.bf16 %v1765_v16, %v1764_v42 }
 0x67b   :  { %v1067_v20 = vpop.f32.mrf.mxu2 }
 0x67c   :  { %1919 = vmatpush.bf16.msrb.mxu2 %v1786_v40 }
 0x680   :  { %1920 = vmatpush.bf16.msrb.mxu2 %v1785_v51 }
 0x683   :  { %v1068_v2 = vpop.f32.mrf.mxu2 }
 0x684   :  { %1921 = vmatpush.bf16.msrb.mxu2 %v1784_v12  ;;  %v1809_v12 = vpop.permute.xlu2 %1808 }
 0x688   :  { %1922 = vmatpush.bf16.msrb.mxu2 %v1783_v37 }
 0x68b   :  { %2626 = vmatmul.msk.bf16.vlgmr.msrb.gmra.mxu2 %vm804_vm5, %v2734_v43  ;;  %v1070_v29 = vpop.f32.mrf.mxu2 }
 0x68c   :  { %v1797_v58 = vpop.permute.xlu2 %1796 }
 0x693   :  { %v1071_v61 = vpop.f32.mrf.mxu2 }
 0x694   :  { %v1825_v50 = vpop.permute.xlu2 %1824 }
 0x69b   :  { %2627 = vmatmul.msk.bf16.gmra.mxu2 %vm804_vm5, %v2735_v47  ;;  %v1073_v53 = vpop.f32.mrf.mxu2 }
 0x6a3   :  { %v1074_v38 = vpop.f32.mrf.mxu2 }
 0x6ab   :  { %2628 = vmatmul.msk.bf16.gmra.mxu2 %vm804_vm5, %v2736_v55 }
 0x6bb   :  { %2629 = vmatmul.msk.bf16.gmra.mxu2 %vm804_vm5, %v2737_v56 }
 0x6cb   :  { %2630 = vmatmul.msk.bf16.gmra.mxu2 %vm804_vm5, %v2738_v41 }
 0x6ce   :  { %v1801_v28 = vpop.permute.xlu0 %1800 }
 0x6d6   :  { %v1789_v25 = vpop.permute.xlu0 %1788 }
 0x6db   :  { %2631 = vmatmul.msk.bf16.gmra.mxu2 %vm804_vm5, %v2739_v13 }
 0x6de   :  { %v1793_v4 = vpop.permute.xlu1 %1792 }
 0x6eb   :  { %2632 = vmatmul.msk.bf16.gmra.mxu2 %vm804_vm5, %v2740_v52 }
 0x6fb   :  { %2633 = vmatmul.msk.bf16.gmra.mxu2 %vm804_vm5, %v2741_v62 }
 0x70e   :  { %v1924_v37 = vpop.f32.mrf.mxu2 }
 0x70f   :  { %v1925_v35 = vadd.f32 %v1924_v37, %v1789_v25 }
 0x716   :  { %v1926_v26 = vpop.f32.mrf.mxu2 }
 0x717   :  { %v1927_v14 = vadd.f32 %v1926_v26, %v1793_v4  ;;  %v2840_v4 = vld [vmem:[%s3917_s1 + $0x58] sm:$0xff] }
 0x71e   :  { %v1929_v9 = vpop.f32.mrf.mxu2 }
 0x71f   :  { %v1930_v34 = vadd.f32 %v1929_v9, %v1797_v58  ;;  %v2888_v9 = vmov 6  }
 0x720   :  { %2821 = vset.pattern.permute.xlu0 %v2888_v9  ;;  %2820 = vset.pattern.permute.xlu2 %v2888_v9 }
 0x721   :  { %2822 = vset.pattern.permute.xlu1 %v2888_v9 }
 0x722   :  { %2066 = vperm.xlu1 %2822, %v3399_v32   ;;  %v2838_v32 = vld [vmem:[%s3917_s1 + $0x50] sm:$0xff] }
 0x726   :  { %v1931_v11 = vpop.f32.mrf.mxu2 }
 0x727   :  { %v1932_v60 = vadd.f32 %v1931_v11, %v1801_v28 }
 0x72a   :  { %2058 = vperm.xlu1 %2822, %v2838_v32  }
 0x72e   :  { %v1934_v59 = vpop.f32.mrf.mxu2 }
 0x72f   :  { %v1935_v37 = vadd.f32 %v1934_v59, %v1805_v18 }
 0x732   :  { %2054 = vperm.xlu1 %2822, %v3437_v30   ;;  %v2842_v30 = vld [vmem:[%s3917_s1 + $0x28] sm:$0xff] }
 0x736   :  { %v1936_v45 = vpop.f32.mrf.mxu2 }
 0x737   :  { %v1937_v26 = vadd.f32 %v1936_v45, %v1809_v12  ;;  %v2836_v12 = vld [vmem:[%s3917_s1 + $0x40] sm:$0xff] }
 0x73a   :  { %2034 = vperm.xlu1 %2822, %v3692_v54   ;;  %v2744_v54 = vld [vmem:[%s3919_s3 + $0x190] sm:$0xff] }
 0x73e   :  { %v3768_v31 = vpop.f32.mrf.mxu2 }
 0x742   :  { %2030 = vperm.xlu1 %2822, %v3702_v6   ;;  %v2746_v6 = vld [vmem:[%s3919_s3 + $0x1a0] sm:$0xff] }
 0x746   :  { %v3770_v22 = vpop.f32.mrf.mxu2 }
 0x74e   :  { %v1944_v8 = vpop.f32.mrf.mxu2 }
 0x74f   :  { %v1945_v10 = vadd.f32 %v1944_v8, %v1821_v23  ;;  %v2837_v8 = vld [vmem:[%s3917_s1 + $0x68] sm:$0xff] }
 0x751   :  { %vm1964_vm8 = vcmp.ge.f32.partialorder %v1945_v10, 0.0  ;;  %v1972_v36 = vmul.f32 0.01, %v1945_v10 }
 0x753   :  { %v1980_v63 = vsel %vm1964_vm8, %v1945_v10, %v1972_v36  ;;  %v1940_v10 = vadd.f32 %v3768_v31, %v3764_v48  ;;  %v1942_v36 = vadd.f32 %v3770_v22, %v3766_v27  ;;  %v2841_v48 = vld [vmem:[%s3917_s1 + $0x10] sm:$0xff]  ;;  %v2742_v27 = vld [vmem:[%s3919_s3 + $0x180] sm:$0xff] }
 0x754   :  { %v3772_v51 = vadd.f32 %v1980_v63, %v1925_v35  ;;  %v2748_v22 = vld [vmem:[%s3919_s3 + $0x1b0] sm:$0xff] }
 0x756   :  { %v1946_v0 = vpop.f32.mrf.mxu2 }
 0x757   :  { %v1947_v1 = vadd.f32 %v1946_v0, %v1825_v50  ;;  %v2839_v0 = vld [vmem:[%s3917_s1 + $0x38] sm:$0xff] }
 0x759   :  { %vm1965_vm9 = vcmp.ge.f32.partialorder %v1947_v1, 0.0  ;;  %v1973_v49 = vmul.f32 0.01, %v1947_v1 }
 0x75b   :  { %v1981_v3 = vsel %vm1965_vm9, %v1947_v1, %v1973_v49 }
 0x75c   :  { %v3774_v5 = vadd.f32 %v1981_v3, %v1927_v14  ;;  %v2749_v3 = vld [vmem:[%s3919_s3 + $0x1b8] sm:$0xff] }
 0x75e   :  { %v1949_v44 = vpop.f32.mrf.mxu2  ;;  %v2013_v19 = vpack.c.bf16 %v3774_v5, %v3772_v51 }
 0x75f   :  { %v1950_v42 = vadd.f32 %v1949_v44, %v1829_v7 }
 0x761   :  { %v1974_v16 = vmul.f32 0.01, %v1950_v42  ;;  %vm1966_vm10 = vcmp.ge.f32.partialorder %v1950_v42, 0.0 }
 0x763   :  { %v1982_v55 = vsel %vm1966_vm10, %v1950_v42, %v1974_v16 }
 0x764   :  { %v1990_v20 = vadd.f32 %v1982_v55, %v1930_v34 }
 0x766   :  { %v1951_v40 = vpop.f32.mrf.mxu2 }
 0x767   :  { %v1952_v43 = vadd.f32 %v1951_v40, %v1833_v57 }
 0x769   :  { %vm1967_vm11 = vcmp.ge.f32.partialorder %v1952_v43, 0.0  ;;  %v1975_v47 = vmul.f32 0.01, %v1952_v43 }
 0x76b   :  { %v1983_v56 = vsel %vm1967_vm11, %v1952_v43, %v1975_v47 }
 0x76c   :  { %v1991_v2 = vadd.f32 %v1983_v56, %v1932_v60 }
 0x76e   :  { %v1954_v41 = vpop.f32.mrf.mxu2  ;;  %v2014_v29 = vpack.c.bf16 %v1991_v2, %v1990_v20 }
 0x76f   :  { %v1955_v61 = vadd.f32 %v1954_v41, %v1837_v17  ;;  %v2834_v17 = vld [vmem:[%s3917_s1 + $0x78] sm:$0xff] }
 0x770   :  { %2078 = vperm.xlu0 %2821, %v2834_v17  }
 0x771   :  { %v1976_v13 = vmul.f32 0.01, %v1955_v61  ;;  %vm1968_vm12 = vcmp.ge.f32.partialorder %v1955_v61, 0.0 }
 0x773   :  { %v1984_v62 = vsel %vm1968_vm12, %v1955_v61, %v1976_v13 }
 0x774   :  { %v1992_v57 = vadd.f32 %v1984_v62, %v1935_v37 }
 0x776   :  { %v1956_v53 = vpop.f32.mrf.mxu2 }
 0x777   :  { %v1957_v38 = vadd.f32 %v1956_v53, %v1841_v46  ;;  %v2835_v46 = vld [vmem:[%s3917_s1 + $0x70] sm:$0xff] }
 0x778   :  { %2074 = vperm.xlu2 %2820, %v2835_v46   ;;  %2050 = vperm.xlu0 %2821, %v2836_v12  }
 0x779   :  { %vm1969_vm13 = vcmp.ge.f32.partialorder %v1957_v38, 0.0  ;;  %v1977_v52 = vmul.f32 0.01, %v1957_v38 }
 0x77b   :  { %v1985_v7 = vsel %vm1969_vm13, %v1957_v38, %v1977_v52 }
 0x77c   :  { %v1993_v23 = vadd.f32 %v1985_v7, %v1937_v26 }
 0x77e   :  { %v1959_v11 = vpop.f32.mrf.mxu2  ;;  %v2015_v28 = vpack.c.bf16 %v1993_v23, %v1992_v57 }
 0x77f   :  { %v1960_v59 = vadd.f32 %v1959_v11, %v3762_v21 }
 0x780   :  { %2070 = vperm.xlu2 %2820, %v2837_v8   ;;  %2046 = vperm.xlu0 %2821, %v2839_v0  }
 0x781   :  { %v1978_v45 = vmul.f32 0.01, %v1960_v59  ;;  %vm1970_vm14 = vcmp.ge.f32.partialorder %v1960_v59, 0.0 }
 0x783   :  { %v1986_v25 = vsel %vm1970_vm14, %v1960_v59, %v1978_v45 }
 0x784   :  { %v1994_v35 = vadd.f32 %v1986_v25, %v1940_v10 }
 0x786   :  { %v1961_v18 = vpop.f32.mrf.mxu2 }
 0x787   :  { %v1962_v58 = vadd.f32 %v1961_v18, %v3760_v24 }
 0x788   :  { %2062 = vperm.xlu2 %2820, %v2840_v4   ;;  %2026 = vperm.xlu0 %2821, %v2841_v48  }
 0x789   :  { %vm1971_vm15 = vcmp.ge.f32.partialorder %v1962_v58, 0.0  ;;  %v1979_v21 = vmul.f32 0.01, %v1962_v58 }
 0x78b   :  { %v1987_v24 = vsel %vm1971_vm15, %v1962_v58, %v1979_v21 }
 0x78c   :  { %v1995_v63 = vadd.f32 %v1987_v24, %v1942_v36 }
 0x78e   :  { %v2016_v50 = vpack.c.bf16 %v1995_v63, %v1994_v35 }
 0x790   :  { %2149 = vmatpush.bf16.msrb.mxu3 %v2016_v50  ;;  %2042 = vperm.xlu2 %2820, %v3677_v15   ;;  %v2743_v15 = vld [vmem:[%s3919_s3 + $0x188] sm:$0xff] }
 0x791   :  { %2022 = vperm.xlu0 %2821, %v3722_v39   ;;  %v2745_v39 = vld [vmem:[%s3919_s3 + $0x198] sm:$0xff] }
 0x794   :  { %2150 = vmatpush.bf16.msrb.mxu3 %v2015_v28  ;;  %v3863_v44 = vpop.permute.xlu1 %2066 }
 0x798   :  { %2151 = vmatpush.bf16.msrb.mxu3 %v2014_v29  ;;  %2038 = vperm.xlu2 %2820, %v2842_v30  }
 0x79c   :  { %2152 = vmatpush.bf16.msrb.mxu3 %v2013_v19  ;;  %v3865_v16 = vpop.permute.xlu1 %2058 }
 0x79f   :  { %2682 = vmatmul.msk.bf16.vlgmr.msrb.gmra.mxu3 %vm804_vm5, %v2742_v27 }
 0x7a0   :  { %2018 = vperm.xlu2 %2820, %v3715_v33   ;;  %v2747_v33 = vld [vmem:[%s3919_s3 + $0x1a8] sm:$0xff] }
 0x7a4   :  { %v3867_v55 = vpop.permute.xlu1 %2054 }
 0x7ac   :  { %v2035_v29 = vpop.permute.xlu1 %2034 }
 0x7af   :  { %2683 = vmatmul.msk.bf16.gmra.mxu3 %vm804_vm5, %v2743_v15 }
 0x7b4   :  { %v2031_v62 = vpop.permute.xlu1 %2030 }
 0x7bf   :  { %2684 = vmatmul.msk.bf16.gmra.mxu3 %vm804_vm5, %v2744_v54 }
 0x7cf   :  { %2685 = vmatmul.msk.bf16.gmra.mxu3 %vm804_vm5, %v2745_v39 }
 0x7d2   :  { %v3845_v31 = vpop.permute.xlu2 %2074 }
 0x7da   :  { %v3850_v51 = vpop.permute.xlu2 %2070 }
 0x7df   :  { %2686 = vmatmul.msk.bf16.gmra.mxu3 %vm804_vm5, %v2746_v6 }
 0x7e2   :  { %v3853_v1 = vpop.permute.xlu0 %2078  ;;  %v3855_v49 = vpop.permute.xlu2 %2062 }
 0x7ea   :  { %v3857_v14 = vpop.permute.xlu0 %2050  ;;  %v2043_v5 = vpop.permute.xlu2 %2042 }
 0x7ef   :  { %2687 = vmatmul.msk.bf16.gmra.mxu3 %vm804_vm5, %v2747_v33 }
 0x7f2   :  { %v2047_v19 = vpop.permute.xlu0 %2046  ;;  %v2039_v42 = vpop.permute.xlu2 %2038 }
 0x7fa   :  { %v2027_v40 = vpop.permute.xlu0 %2026  ;;  %v2019_v47 = vpop.permute.xlu2 %2018 }
 0x7ff   :  { %2688 = vmatmul.msk.bf16.gmra.mxu3 %vm804_vm5, %v2748_v22 }
 0x803   :  { %v2023_v60 = vpop.permute.xlu0 %2022 }
 0x80f   :  { %2689 = vmatmul.msk.bf16.gmra.mxu3 %vm804_vm5, %v2749_v3 }
 0x822   :  { %v2154_v43 = vpop.f32.mrf.mxu3 }
 0x823   :  { %v2155_v34 = vadd.f32 %v2154_v43, %v2019_v47 }
 0x825   :  { %v2210_v20 = vmul.f32 0.01, %v2155_v34  ;;  %vm2194_vm0 = vcmp.ge.f32.partialorder %v2155_v34, 0.0 }
 0x827   :  { %v3869_v61 = vsel %vm2194_vm0, %v2155_v34, %v2210_v20 }
 0x82a   :  { %v2156_v56 = vpop.f32.mrf.mxu3 }
 0x82b   :  { %v2157_v2 = vadd.f32 %v2156_v56, %v2023_v60 }
 0x82d   :  { %vm2195_vm1 = vcmp.ge.f32.partialorder %v2157_v2, 0.0  ;;  %v2211_v41 = vmul.f32 0.01, %v2157_v2 }
 0x82f   :  { %v3871_v13 = vsel %vm2195_vm1, %v2157_v2, %v2211_v41 }
 0x830   :  { %v2243_v53 = vpack.c.bf16 %v3871_v13, %v3869_v61 }
 0x832   :  { %v2159_v38 = vpop.f32.mrf.mxu3 }
 0x833   :  { %v2160_v52 = vadd.f32 %v2159_v38, %v2027_v40 }
 0x835   :  { %v2212_v26 = vmul.f32 0.01, %v2160_v52  ;;  %vm2196_vm5 = vcmp.ge.f32.partialorder %v2160_v52, 0.0 }
 0x837   :  { %v3875_v23 = vsel %vm2196_vm5, %v2160_v52, %v2212_v26 }
 0x83a   :  { %v2161_v37 = vpop.f32.mrf.mxu3 }
 0x83b   :  { %v2162_v7 = vadd.f32 %v2161_v37, %v2031_v62 }
 0x83d   :  { %vm2197_vm2 = vcmp.ge.f32.partialorder %v2162_v7, 0.0  ;;  %v2213_v57 = vmul.f32 0.01, %v2162_v7 }
 0x83f   :  { %v3877_v9 = vsel %vm2197_vm2, %v2162_v7, %v2213_v57 }
 0x840   :  { %v2244_v11 = vpack.c.bf16 %v3877_v9, %v3875_v23  ;;  %v2843_v23 = vld [vmem:[%s3916_s0 + $0x1] sm:$0x3] }
 0x842   :  { %v2164_v28 = vpop.f32.mrf.mxu3 }
 0x843   :  { %v2165_v17 = vadd.f32 %v2164_v28, %v2035_v29 }
 0x845   :  { %v2214_v59 = vmul.f32 0.01, %v2165_v17  ;;  %vm2198_vm3 = vcmp.ge.f32.partialorder %v2165_v17, 0.0 }
 0x847   :  { %v3881_v12 = vsel %vm2198_vm3, %v2165_v17, %v2214_v59 }
 0x84a   :  { %v2166_v46 = vpop.f32.mrf.mxu3 }
 0x84b   :  { %v2167_v45 = vadd.f32 %v2166_v46, %v2039_v42 }
 0x84d   :  { %vm2199_vm4 = vcmp.ge.f32.partialorder %v2167_v45, 0.0  ;;  %v2215_v18 = vmul.f32 0.01, %v2167_v45 }
 0x84f   :  { %v3883_v58 = vsel %vm2199_vm4, %v2167_v45, %v2215_v18 }
 0x850   :  { %v2245_v8 = vpack.c.bf16 %v3883_v58, %v3881_v12 }
 0x852   :  { %v2169_v32 = vpop.f32.mrf.mxu3 }
 0x853   :  { %v2170_v21 = vadd.f32 %v2169_v32, %v2043_v5 }
 0x855   :  { %v2216_v10 = vmul.f32 0.01, %v2170_v21  ;;  %vm2200_vm6 = vcmp.ge.f32.partialorder %v2170_v21, 0.0 }
 0x857   :  { %v2232_v35 = vsel %vm2200_vm6, %v2170_v21, %v2216_v10 }
 0x85a   :  { %v2171_v25 = vpop.f32.mrf.mxu3 }
 0x85b   :  { %v2172_v36 = vadd.f32 %v2171_v25, %v2047_v19 }
 0x85d   :  { %vm2201_vm7 = vcmp.ge.f32.partialorder %v2172_v36, 0.0  ;;  %v2217_v24 = vmul.f32 0.01, %v2172_v36 }
 0x85f   :  { %v2233_v63 = vsel %vm2201_vm7, %v2172_v36, %v2217_v24 }
 0x860   :  { %v2246_v50 = vpack.c.bf16 %v2233_v63, %v2232_v35 }
 0x862   :  { %v2174_v0 = vpop.f32.mrf.mxu3 }
 0x863   :  { %v2175_v20 = vadd.f32 %v2174_v0, %v3857_v14  ;;  %v2242_v14 = vld [vmem:[%s3918_s2 + $0x20] sm:$0xf] }
 0x865   :  { %v2218_v38 = vmul.f32 0.01, %v2175_v20  ;;  %vm2202_vm15 = vcmp.ge.f32.partialorder %v2175_v20, 0.0 }
 0x867   :  { %v2234_v26 = vsel %vm2202_vm15, %v2175_v20, %v2218_v38 }
 0x86a   :  { %v2176_v4 = vpop.f32.mrf.mxu3 }
 0x86b   :  { %v2177_v60 = vadd.f32 %v2176_v4, %v3867_v55 }
 0x86d   :  { %v2219_v29 = vmul.f32 0.01, %v2177_v60  ;;  %vm2203_vm14 = vcmp.ge.f32.partialorder %v2177_v60, 0.0 }
 0x86f   :  { %v2235_v37 = vsel %vm2203_vm14, %v2177_v60, %v2219_v29 }
 0x870   :  { %v2247_v7 = vpack.c.bf16 %v2235_v37, %v2234_v26 }
 0x872   :  { %v2179_v48 = vpop.f32.mrf.mxu3 }
 0x873   :  { %v2180_v43 = vadd.f32 %v2179_v48, %v3865_v16 }
 0x875   :  { %v2220_v16 = vmul.f32 0.01, %v2180_v43  ;;  %vm2204_vm13 = vcmp.ge.f32.partialorder %v2180_v43, 0.0 }
 0x877   :  { %v2236_v52 = vsel %vm2204_vm13, %v2180_v43, %v2220_v16 }
 0x87a   :  { %v2181_v27 = vpop.f32.mrf.mxu3 }
 0x87b   :  { %v2182_v19 = vadd.f32 %v2181_v27, %v3855_v49  ;;  %v2889_v49 = vmov 11  }
 0x87c   :  { %2823 = vset.pattern.permute.xlu1 %v2889_v49  ;;  %2824 = vset.pattern.permute.xlu0 %v2889_v49 }
 0x87d   :  { %vm2205_vm12 = vcmp.ge.f32.partialorder %v2182_v19, 0.0 }
 0x882   :  { %v2184_v30 = vpop.f32.mrf.mxu3 }
 0x883   :  { %v2185_v22 = vadd.f32 %v2184_v30, %v3863_v44  ;;  %v2221_v44 = vmul.f32 0.01, %v2182_v19 }
 0x885   :  { %v2222_v47 = vmul.f32 0.01, %v2185_v22  ;;  %vm2206_vm11 = vcmp.ge.f32.partialorder %v2185_v22, 0.0  ;;  %v2237_v55 = vsel %vm2205_vm12, %v2182_v19, %v2221_v44 }
 0x886   :  { %v2248_v62 = vpack.c.bf16 %v2237_v55, %v2236_v52 }
 0x887   :  { %v2238_v2 = vsel %vm2206_vm11, %v2185_v22, %v2222_v47 }
 0x88a   :  { %v2186_v15 = vpop.f32.mrf.mxu3 }
 0x88b   :  { %v2187_v6 = vadd.f32 %v2186_v15, %v3850_v51 }
 0x88d   :  { %v2223_v42 = vmul.f32 0.01, %v2187_v6  ;;  %vm2207_vm10 = vcmp.ge.f32.partialorder %v2187_v6, 0.0 }
 0x88f   :  { %v2239_v56 = vsel %vm2207_vm10, %v2187_v6, %v2223_v42 }
 0x890   :  { %v2249_v41 = vpack.c.bf16 %v2239_v56, %v2238_v2 }
 0x892   :  { %v2189_v54 = vpop.f32.mrf.mxu3 }
 0x893   :  { %v2190_v39 = vadd.f32 %v2189_v54, %v3845_v31 }
 0x895   :  { %v2224_v3 = vmul.f32 0.01, %v2190_v39  ;;  %vm2208_vm8 = vcmp.ge.f32.partialorder %v2190_v39, 0.0 }
 0x897   :  { %v2240_v34 = vsel %vm2208_vm8, %v2190_v39, %v2224_v3 }
 0x89a   :  { %v2191_v33 = vpop.f32.mrf.mxu3 }
 0x89b   :  { %v2192_v5 = vadd.f32 %v2191_v33, %v3853_v1  ;;  %v29_v1 = vld [vmem:[%s3917_s1] sm:$0x3] }
 0x89c   :  { %2266 = vperm.xlu1 %2823, %v29_v1  }
 0x89d   :  { %vm2209_vm9 = vcmp.ge.f32.partialorder %v2192_v5, 0.0  ;;  %v2225_v40 = vmul.f32 0.01, %v2192_v5 }
 0x89f   :  { %v2241_v31 = vsel %vm2209_vm9, %v2192_v5, %v2225_v40 }
 0x8a0   :  { %v2250_v51 = vpack.c.bf16 %v2241_v31, %v2240_v34 }
 0x8a2   :  { %2251 = vmatpush.bf16.msra.mxu0 %v2250_v51 }
 0x8a6   :  { %2252 = vmatpush.bf16.msra.mxu0 %v2249_v41 }
 0x8aa   :  { %2253 = vmatpush.bf16.msra.mxu0 %v2248_v62 }
 0x8ae   :  { %2254 = vmatpush.bf16.msra.mxu0 %v2247_v7 }
 0x8b2   :  { %2255 = vmatpush.bf16.msra.mxu0 %v2246_v50 }
 0x8b6   :  { %2256 = vmatpush.bf16.msra.mxu0 %v2245_v8 }
 0x8ba   :  { %2257 = vmatpush.bf16.msra.mxu0 %v2244_v11 }
 0x8be   :  { %2258 = vmatpush.bf16.msra.mxu0 %v2243_v53 }
 0x8c1   :  { %2259 = vmatmul.bf16.vlgmr.msra.gmra.mxu0 %v2242_v14 }
 0x90e   :  { %v2267_v57 = vpop.permute.xlu1 %2266 }
 0x93e   :  { %v2260_v28 = vpop.f32.mrf.mxu0 }
 0x93f   :  { %v2269_v17 = vadd.f32 %v2267_v57, %v2260_v28 }
 0x941   :  { %v2270_v61 = vadd.f32 %v2843_v23, %v2269_v17 }
 0x943   :  { %2271 = vst [vmem:[#allocation2] sm:$0x3] %v2270_v61 }
 0x944   :  { %2282 = dma.vmem_to_hbm [thread:$0]  %s2278_s10, 32, %s2280_s13, [#allocation3]  }
 0x946   :  { %v2262_v13 = vpop.f32.mrf.mxu0 }
 0x947   :  { %2868 = dma.done.wait [#allocation3], 32  }
 0x948   :  { %2869 = vsyncadd [#allocation3], 4294967264 }
 0x949   :  { %2287 = vsyncpa [#allocation3], 1 }

</bundles_post_ra>
